<compile_context>
chip_gen: v7x
topology: tpu7x:2x2x1
jax: 0.10.0
libtpu: 0.0.40
codegen_flags: <defaults>
</compile_context>

<pallas_src>
import functools

import jax
import jax.numpy as jnp
from jax.experimental import pallas as pl
from jax.experimental.pallas import tpu as pltpu


# ---------------------------------------------------------------------------
# Kernels
# ---------------------------------------------------------------------------
def _hidden_stack(x_bf16, w1_ref, b1_ref, n_hidden_layers):
    """[Linear(H,H) + ReLU] x n_hidden. x already bf16; returns f32 (TM, H)."""
    h = jnp.dot(x_bf16, w1_ref[0],
                preferred_element_type=jnp.float32) + b1_ref[0]
    h = jnp.maximum(h, 0.0)
    for l in range(1, n_hidden_layers):
        h = jnp.dot(h.astype(jnp.bfloat16), w1_ref[l],
                    preferred_element_type=jnp.float32) + b1_ref[l]
        h = jnp.maximum(h, 0.0)
    return h


def _stats_kernel(x_ref, w1_ref, b1_ref, sum_ref, sq_ref, *,
                  n_hidden_layers, tile_m, tiles_per_core, m_total, mask_rows):
    """Hidden stack; accumulate per-core column sum / sum-of-squares."""
    c = pl.program_id(0)          # core-split index ('parallel')
    j = pl.program_id(1)          # tile index within this split ('arbitrary')

    h = _hidden_stack(x_ref[...], w1_ref, b1_ref, n_hidden_layers)

    if mask_rows:
        # Zero padded / out-of-range rows so they don't pollute the GroupNorm
        # statistics (covers partial trailing tiles and clamped empty tiles).
        base = (c * tiles_per_core + j) * tile_m
        row = base + jax.lax.broadcasted_iota(jnp.int32, h.shape, 0)
        h = jnp.where(row < m_total, h, 0.0)

    @pl.when(j == 0)
    def _():
        sum_ref[...] = jnp.zeros_like(sum_ref)
        sq_ref[...] = jnp.zeros_like(sq_ref)

    sum_ref[...] += jnp.sum(h, axis=0, keepdims=True)[None]      # (1, 1, H)
    sq_ref[...] += jnp.sum(h * h, axis=0, keepdims=True)[None]   # (1, 1, H)


def _apply_kernel(x_ref, w1_ref, b1_ref, scale_ref, shift_ref, wc_ref, bc_ref,
                  o_ref, *, n_hidden_layers):
    """Recompute hidden stack, folded GroupNorm + ReLU + 1x1 conv (transposed
    lane-dense output block (O, TM))."""
    h = _hidden_stack(x_ref[...], w1_ref, b1_ref, n_hidden_layers)
    # GroupNorm folded to per-channel affine (scale = gamma*rstd,
    # shift = beta - mean*gamma*rstd), then ReLU.
    hn = jnp.maximum(h * scale_ref[...] + shift_ref[...], 0.0)
    # Conv2d(H, O, k=1): y[o, m] = sum_h wc[o, h] * hn[m, h] + bc[o]
    # computed as an NT matmul so the (O, TM) store is lane-dense.
    y_t = jax.lax.dot_general(
        wc_ref[...], hn.astype(jnp.bfloat16),
        dimension_numbers=(((1,), (1,)), ((), ())),
        preferred_element_type=jnp.float32) + bc_ref[...]
    o_ref[...] = y_t.astype(o_ref.dtype)


# ---------------------------------------------------------------------------
# Sizing helpers
# ---------------------------------------------------------------------------
def _vmem_limit_bytes():
    """Per-generation scoped-VMEM limit with headroom for compiler scratch."""
    cap = 64 << 20
    try:
        cap = int(pltpu.get_tpu_info().vmem_capacity_bytes)
    except Exception:
        pass
    return min(int(cap * 0.8), cap - (8 << 20))


def _pick_tile_m(m, h, o, n_hidden, x_itemsize, vmem_limit):
    """Largest row tile whose buffers + intermediates fit the VMEM budget."""
    # Resident (single-buffered via pl.Buffered(1)) weights.
    weight_bytes = n_hidden * h * h * 2 + n_hidden * h * 4 + h * o * 2 + o * 4
    # Per-row: double-buffered bf16 x tile, double-buffered (O, tm) f32 out,
    # ~4-5 live f32/bf16 (tm, H) intermediates inside the body.
    per_row = 2 * h * x_itemsize + 8 * o + 20 * h
    budget = int(0.6 * vmem_limit) - weight_bytes
    tm = max(budget // per_row, 512)
    tm -= tm % 256
    if tm >= m:
        return m
    return tm


def _const_spec(block_shape, index_map):
    """Constant-block-index operand: single-buffer it (frees VMEM)."""
    try:
        return pl.BlockSpec(block_shape, index_map,
                            pipeline_mode=pl.Buffered(1))
    except Exception:
        return pl.BlockSpec(block_shape, index_map)


# ---------------------------------------------------------------------------
# Forward
# ---------------------------------------------------------------------------
def mlp_forward(x_node, x, edge_index, params, *, num_groups=32, eps=1e-5,
                tile_m=None):
    H = params["gamma"].shape[-1]
    x2 = x.reshape(-1, H) if x.ndim == 3 else x
    M = x2.shape[0]
    O = params["wct"].shape[-1]
    n_hidden = params["w1t"].shape[0]
    assert n_hidden >= 1
    assert H % num_groups == 0
    # torch's final reshape(-1, edge_index.shape[1]).permute((1, 0)) yields
    # (E, O) only when E == num_nodes**2 == M (the dense-edge case in DP-GST).
    assert edge_index.shape[1] == M

    # Both passes consume bf16 matmul operands anyway -> feed x as bf16
    # (halves the dominant HBM stream of each pass and the x tile's VMEM).
    x2 = x2.astype(jnp.bfloat16)

    vmem_limit = _vmem_limit_bytes()
    tm = tile_m if tile_m is not None else _pick_tile_m(
        M, H, O, n_hidden, x2.dtype.itemsize, vmem_limit)
    tm = min(tm, M)
    assert tm == M or tm % 128 == 0, "tile_m must be a multiple of 128 (or M)"
    n_tiles = pl.cdiv(M, tm)

    # Stats-pass grid: (num_splits, tiles_per_core); leading axis 'parallel'
    # so v7x's two TensorCores each reduce half the tiles into their own
    # partial-sum row.
    num_splits = 2 if n_tiles >= 2 else 1
    tpc = pl.cdiv(n_tiles, num_splits)
    mask_rows = (num_splits * tpc * tm) != M
    last_tile = n_tiles - 1

    # Weights in bf16 for the MXU; biases / affine params stay f32.
    w1_bf = params["w1t"].astype(jnp.bfloat16)                  # (L-1, H, H)
    b1_f32 = params["b1"].astype(jnp.float32)                   # (L-1, 1, H)
    wc_oh = jnp.transpose(params["wct"]).astype(jnp.bfloat16)   # (O, H)
    bc_col = params["bc"].reshape(O, 1).astype(jnp.float32)     # (O, 1)

    cparams_stats = pltpu.CompilerParams(
        dimension_semantics=("parallel", "arbitrary"),
        vmem_limit_bytes=vmem_limit)
    cparams_apply = pltpu.CompilerParams(
        dimension_semantics=("parallel",), vmem_limit_bytes=vmem_limit)

    hidden_flops = 2 * M * H * H * n_hidden
    w_bytes = n_hidden * H * H * 2 + n_hidden * H * 4

    # ---- Pass 1: per-column sum / sum-of-squares of post-stack activations.
    col_sum3, col_sq3 = pl.pallas_call(
        functools.partial(_stats_kernel, n_hidden_layers=n_hidden, tile_m=tm,
                          tiles_per_core=tpc, m_total=M, mask_rows=mask_rows),
        grid=(num_splits, tpc),
        out_shape=(jax.ShapeDtypeStruct((num_splits, 1, H), jnp.float32),
                   jax.ShapeDtypeStruct((num_splits, 1, H), jnp.float32)),
        in_specs=[
            pl.BlockSpec(
                (tm, H),
                lambda c, j: (jnp.minimum(c * tpc + j, last_tile), 0)),
            _const_spec((n_hidden, H, H), lambda c, j: (0, 0, 0)),
            _const_spec((n_hidden, 1, H), lambda c, j: (0, 0, 0)),
        ],
        out_specs=[pl.BlockSpec((1, 1, H), lambda c, j: (c, 0, 0)),
                   pl.BlockSpec((1, 1, H), lambda c, j: (c, 0, 0))],
        compiler_params=cparams_stats,
        cost_estimate=pl.CostEstimate(
            flops=hidden_flops, transcendentals=0,
            bytes_accessed=M * H * 2 + w_bytes + 2 * num_splits * H * 4),
    )(x2, w1_bf, b1_f32)

    # ---- O(H) GroupNorm stat fold (group mean/var -> per-channel affine).
    col_sum = col_sum3.reshape(num_splits, H).sum(axis=0)       # (H,)
    col_sq = col_sq3.reshape(num_splits, H).sum(axis=0)         # (H,)
    cpg = H // num_groups
    denom = jnp.float32(M * cpg)
    g_sum = col_sum.reshape(num_groups, cpg).sum(axis=-1)
    g_sq = col_sq.reshape(num_groups, cpg).sum(axis=-1)
    g_mean = g_sum / denom
    g_var = jnp.maximum(g_sq / denom - g_mean * g_mean, 0.0)    # guard cancel.
    g_rstd = jax.lax.rsqrt(g_var + eps)
    mean_c = jnp.repeat(g_mean, cpg)                            # (H,)
    rstd_c = jnp.repeat(g_rstd, cpg)                            # (H,)
    gamma = params["gamma"].reshape(-1).astype(jnp.float32)
    beta = params["beta"].reshape(-1).astype(jnp.float32)
    scale = (gamma * rstd_c).reshape(1, H)
    shift = (beta - gamma * rstd_c * mean_c).reshape(1, H)

    # ---- Pass 2: recompute stack, norm + ReLU + 1x1 conv, (O, M) output.
    y_t = pl.pallas_call(
        functools.partial(_apply_kernel, n_hidden_layers=n_hidden),
        grid=(n_tiles,),
        out_shape=jax.ShapeDtypeStruct((O, M), jnp.float32),
        in_specs=[
            pl.BlockSpec((tm, H), lambda i: (i, 0)),
            _const_spec((n_hidden, H, H), lambda i: (0, 0, 0)),
            _const_spec((n_hidden, 1, H), lambda i: (0, 0, 0)),
            _const_spec((1, H), lambda i: (0, 0)),
            _const_spec((1, H), lambda i: (0, 0)),
            _const_spec((O, H), lambda i: (0, 0)),
            _const_spec((O, 1), lambda i: (0, 0)),
        ],
        out_specs=pl.BlockSpec((O, tm), lambda i: (0, i)),
        compiler_params=cparams_apply,
        cost_estimate=pl.CostEstimate(
            flops=hidden_flops + 2 * M * H * O, transcendentals=0,
            bytes_accessed=M * H * 2 + M * O * 4 + w_bytes + H * O * 2),
    )(x2, w1_bf, b1_f32, scale, shift, wc_oh, bc_col)

    # (O, M) -> (M, O): tiny transpose, matching torch's
    # reshape(-1, E).permute((1, 0)).
    return jnp.transpose(y_t)


# ---------------------------------------------------------------------------
# Pure-JAX reference (torch semantics, bf16 matmul operands / f32 accumulate)
# ---------------------------------------------------------------------------
def mlp_reference(x_node, x, edge_index, params, *, num_groups=32, eps=1e-5):
    H = params["gamma"].shape[-1]
    h = (x.reshape(-1, H) if x.ndim == 3 else x).astype(jnp.float32)
    for l in range(params["w1t"].shape[0]):
        w = params["w1t"][l].astype(jnp.bfloat16)
        h = jnp.dot(h.astype(jnp.bfloat16), w,
                    preferred_element_type=jnp.float32) + params["b1"][l]
        h = jnp.maximum(h, 0.0)
    M = h.shape[0]
    G, C = num_groups, H // num_groups
    h3 = h.reshape(M, G, C)
    mean = h3.mean(axis=(0, 2), keepdims=True)
    var = ((h3 - mean) ** 2).mean(axis=(0, 2), keepdims=True)
    hn = ((h3 - mean) / jnp.sqrt(var + eps)).reshape(M, H)
    hn = hn * params["gamma"] + params["beta"]
    hn = jnp.maximum(hn, 0.0)
    wc = params["wct"].astype(jnp.bfloat16)
    return jnp.dot(hn.astype(jnp.bfloat16), wc,
                   preferred_element_type=jnp.float32) + params["bc"]


if __name__ == "__main__":
    hidden_dim, output_dim, L = 128, 2, 2
    num_nodes = 32
    N = num_nodes
    M = N * N

    key = jax.random.PRNGKey(0)
    k = jax.random.split(key, 6)

    # inputs (only x_node.shape[0] and edge_index.shape[1] are used structurally)
    x_node = jax.random.normal(k[0], (N, 16), jnp.float32)
    x = jax.random.normal(k[1], (N, N, hidden_dim), jnp.float32)
    ii, jj = jnp.meshgrid(jnp.arange(N), jnp.arange(N), indexing="ij")
    edge_index = jnp.stack([ii.reshape(-1), jj.reshape(-1)], axis=0).astype(jnp.int32)

    # deterministic parameter init (shapes from __init__; torch Linear weight
    # (out,in) stored pre-transposed as (in,out); Conv2d 1x1 weight (O,H,1,1)
    # stored as (H,O))
    init_scale = 1.0 / jnp.sqrt(jnp.float32(hidden_dim))
    params = {
        "w1t": jax.random.uniform(k[2], (L - 1, hidden_dim, hidden_dim),
                                  jnp.float32, -init_scale, init_scale),
        "b1": jax.random.uniform(k[3], (L - 1, 1, hidden_dim),
                                 jnp.float32, -init_scale, init_scale),
        "gamma": jnp.ones((1, hidden_dim), jnp.float32),   # GroupNorm defaults
        "beta": jnp.zeros((1, hidden_dim), jnp.float32),
        "wct": jax.random.uniform(k[4], (hidden_dim, output_dim),
                                  jnp.float32, -init_scale, init_scale),
        "bc": jax.random.uniform(k[5], (1, output_dim), jnp.float32,
                                 -init_scale, init_scale),
    }

    y_ref = mlp_reference(x_node, x, edge_index, params, num_groups=32)

    # Perf config: auto tile (single M-row tile at this size).
    y = mlp_forward(x_node, x, edge_index, params, num_groups=32)
    y = jax.block_until_ready(y)
    assert y.shape == (M, output_dim)
    assert jnp.allclose(y, y_ref, atol=2e-3, rtol=2e-3), "mismatch (auto tile)"

    # Tiled config: exercises the multi-tile pipeline, the two-way stats
    # split, and the masked partial / clamped-empty trailing tiles
    # (3 tiles of 384 rows over M=1024).
    y2 = mlp_forward(x_node, x, edge_index, params, num_groups=32, tile_m=384)
    y2 = jax.block_until_ready(y2)
    assert jnp.allclose(y2, y_ref, atol=2e-3, rtol=2e-3), "mismatch (tiled)"

    print("KERNEL_OK")
</pallas_src>

<mosaic_0001>
module attributes {stable_mosaic.version = 11 : i64} {
  func.func @_stats_kernel(%arg0: i32, %arg1: i32, %arg2: memref<1024x128xbf16, #tpu.memory_space<vmem>>, %arg3: memref<1x128x128xbf16, #tpu.memory_space<vmem>>, %arg4: memref<1x1x128xf32, #tpu.memory_space<vmem>>, %arg5: memref<1x1x128xf32, #tpu.memory_space<vmem>>, %arg6: memref<1x1x128xf32, #tpu.memory_space<vmem>>) attributes {dimension_semantics = [#tpu.dimension_semantics<parallel>, #tpu.dimension_semantics<arbitrary>], iteration_bounds = array<i64: 1, 1>, scalar_prefetch = 0 : i64, scratch_operands = 0 : i64, tpu.core_type = #tpu.core_type<tc>, window_params = [{transform_indices = @transform_0, window_bounds = array<i64: 1024, 128>}, {pipeline_mode = #tpu.pipeline_mode<synchronous>, transform_indices = @transform_1, window_bounds = array<i64: 1, 128, 128>}, {pipeline_mode = #tpu.pipeline_mode<synchronous>, transform_indices = @transform_2, window_bounds = array<i64: 1, 1, 128>}, {transform_indices = @transform_3, window_bounds = array<i64: 1, 1, 128>}, {transform_indices = @transform_4, window_bounds = array<i64: 1, 1, 128>}]} {
    %c0 = arith.constant 0 : index
    %c0_0 = arith.constant 0 : index
    %0 = vector.load %arg2[%c0, %c0_0] : memref<1024x128xbf16, #tpu.memory_space<vmem>>, vector<1024x128xbf16>
    %c0_1 = arith.constant 0 : index
    %c0_2 = arith.constant 0 : index
    %c0_3 = arith.constant 0 : index
    %1 = vector.load %arg3[%c0_1, %c0_2, %c0_3] : memref<1x128x128xbf16, #tpu.memory_space<vmem>>, vector<1x128x128xbf16>
    %2 = vector.shape_cast %1 : vector<1x128x128xbf16> to vector<128x128xbf16>
    %cst = arith.constant dense<0.000000e+00> : vector<1024x128xf32>
    %3 = tpu.matmul %0, %2, %cst {dimension_numbers = #tpu.dot_dimension_numbers<[1], [0], [0], [1], [0, 0, 1, 1], [], []>} : vector<1024x128xbf16>, vector<128x128xbf16>, vector<1024x128xf32> -> vector<1024x128xf32>
    %c0_4 = arith.constant 0 : index
    %c0_5 = arith.constant 0 : index
    %c0_6 = arith.constant 0 : index
    %4 = vector.load %arg4[%c0_4, %c0_5, %c0_6] : memref<1x1x128xf32, #tpu.memory_space<vmem>>, vector<1x1x128xf32>
    %5 = vector.shape_cast %4 : vector<1x1x128xf32> to vector<1x128xf32>
    %6 = vector.broadcast %5 : vector<1x128xf32> to vector<1024x128xf32>
    %7 = arith.addf %3, %6 : vector<1024x128xf32>
    %cst_7 = arith.constant 0.000000e+00 : f32
    %8 = vector.broadcast %cst_7 : f32 to vector<1024x128xf32>
    %9 = arith.maximumf %7, %8 : vector<1024x128xf32>
    %c0_i32 = arith.constant 0 : i32
    %10 = arith.cmpi eq, %arg1, %c0_i32 : i32
    %11 = arith.extui %10 : i1 to i32
    %c0_i32_8 = arith.constant 0 : i32
    %12 = arith.cmpi ne, %11, %c0_i32_8 : i32
    scf.if %12 {
      %cst_23 = arith.constant 0.000000e+00 : f32
      %26 = vector.broadcast %cst_23 : f32 to vector<1x1x128xf32>
      %c0_24 = arith.constant 0 : index
      %c0_25 = arith.constant 0 : index
      %c0_26 = arith.constant 0 : index
      %27 = vector.load %arg5[%c0_24, %c0_25, %c0_26] : memref<1x1x128xf32, #tpu.memory_space<vmem>>, vector<1x1x128xf32>
      tpu.vector_store %arg5[%c0_24, %c0_25, %c0_26], %26 {strides = array<i32>} : memref<1x1x128xf32, #tpu.memory_space<vmem>>, vector<1x1x128xf32>,
      %cst_27 = arith.constant 0.000000e+00 : f32
      %28 = vector.broadcast %cst_27 : f32 to vector<1x1x128xf32>
      %c0_28 = arith.constant 0 : index
      %c0_29 = arith.constant 0 : index
      %c0_30 = arith.constant 0 : index
      %29 = vector.load %arg6[%c0_28, %c0_29, %c0_30] : memref<1x1x128xf32, #tpu.memory_space<vmem>>, vector<1x1x128xf32>
      tpu.vector_store %arg6[%c0_28, %c0_29, %c0_30], %28 {strides = array<i32>} : memref<1x1x128xf32, #tpu.memory_space<vmem>>, vector<1x1x128xf32>,
    } else {
    }
    %c0_9 = arith.constant 0 : index
    %c0_10 = arith.constant 0 : index
    %c0_11 = arith.constant 0 : index
    %13 = vector.load %arg5[%c0_9, %c0_10, %c0_11] : memref<1x1x128xf32, #tpu.memory_space<vmem>>, vector<1x1x128xf32>
    %cst_12 = arith.constant dense<0.000000e+00> : vector<128xf32>
    %14 = vector.multi_reduction <add>, %9, %cst_12 [0] : vector<1024x128xf32> to vector<128xf32>
    %15 = vector.shape_cast %14 : vector<128xf32> to vector<1x128xf32>
    %16 = vector.shape_cast %15 : vector<1x128xf32> to vector<1x1x128xf32>
    %17 = arith.addf %13, %16 : vector<1x1x128xf32>
    %c0_13 = arith.constant 0 : index
    %c0_14 = arith.constant 0 : index
    %c0_15 = arith.constant 0 : index
    %18 = vector.load %arg5[%c0_13, %c0_14, %c0_15] : memref<1x1x128xf32, #tpu.memory_space<vmem>>, vector<1x1x128xf32>
    tpu.vector_store %arg5[%c0_13, %c0_14, %c0_15], %17 {strides = array<i32>} : memref<1x1x128xf32, #tpu.memory_space<vmem>>, vector<1x1x128xf32>,
    %c0_16 = arith.constant 0 : index
    %c0_17 = arith.constant 0 : index
    %c0_18 = arith.constant 0 : index
    %19 = vector.load %arg6[%c0_16, %c0_17, %c0_18] : memref<1x1x128xf32, #tpu.memory_space<vmem>>, vector<1x1x128xf32>
    %20 = arith.mulf %9, %9 : vector<1024x128xf32>
    %cst_19 = arith.constant dense<0.000000e+00> : vector<128xf32>
    %21 = vector.multi_reduction <add>, %20, %cst_19 [0] : vector<1024x128xf32> to vector<128xf32>
    %22 = vector.shape_cast %21 : vector<128xf32> to vector<1x128xf32>
    %23 = vector.shape_cast %22 : vector<1x128xf32> to vector<1x1x128xf32>
    %24 = arith.addf %19, %23 : vector<1x1x128xf32>
    %c0_20 = arith.constant 0 : index
    %c0_21 = arith.constant 0 : index
    %c0_22 = arith.constant 0 : index
    %25 = vector.load %arg6[%c0_20, %c0_21, %c0_22] : memref<1x1x128xf32, #tpu.memory_space<vmem>>, vector<1x1x128xf32>
    tpu.vector_store %arg6[%c0_20, %c0_21, %c0_22], %24 {strides = array<i32>} : memref<1x1x128xf32, #tpu.memory_space<vmem>>, vector<1x1x128xf32>,
    return
  }
  func.func @transform_0(%arg0: i32, %arg1: i32) -> (i32, i32) {
    %c1_i32 = arith.constant 1 : i32
    %0 = arith.muli %arg0, %c1_i32 : i32
    %1 = arith.addi %0, %arg1 : i32
    %c0_i32 = arith.constant 0 : i32
    %2 = arith.minsi %1, %c0_i32 : i32
    %c0_i32_0 = arith.constant 0 : i32
    %c0_i32_1 = arith.constant 0 : i32
    return %2, %c0_i32_0 : i32, i32
  }
  func.func @transform_1(%arg0: i32, %arg1: i32) -> (i32, i32, i32) {
    %c0_i32 = arith.constant 0 : i32
    %c0_i32_0 = arith.constant 0 : i32
    %c0_i32_1 = arith.constant 0 : i32
    %c0_i32_2 = arith.constant 0 : i32
    return %c0_i32, %c0_i32_0, %c0_i32_1 : i32, i32, i32
  }
  func.func @transform_2(%arg0: i32, %arg1: i32) -> (i32, i32, i32) {
    %c0_i32 = arith.constant 0 : i32
    %c0_i32_0 = arith.constant 0 : i32
    %c0_i32_1 = arith.constant 0 : i32
    %c0_i32_2 = arith.constant 0 : i32
    return %c0_i32, %c0_i32_0, %c0_i32_1 : i32, i32, i32
  }
  func.func @transform_3(%arg0: i32, %arg1: i32) -> (i32, i32, i32) {
    %c0_i32 = arith.constant 0 : i32
    %c0_i32_0 = arith.constant 0 : i32
    %c0_i32_1 = arith.constant 0 : i32
    return %arg0, %c0_i32, %c0_i32_0 : i32, i32, i32
  }
  func.func @transform_4(%arg0: i32, %arg1: i32) -> (i32, i32, i32) {
    %c0_i32 = arith.constant 0 : i32
    %c0_i32_0 = arith.constant 0 : i32
    %c0_i32_1 = arith.constant 0 : i32
    return %arg0, %c0_i32, %c0_i32_0 : i32, i32, i32
  }
}

</mosaic_0001>

<bundles_post_ra>
// kernel: tpu_custom_call.1
= control target key start
LH: loop header
LB: loop body
LE: loop exit
PB: predicated region body
PF: predicated region fallthrough
CT: control target
= control target key end

     0   :  { %10 = vsyncpa [#allocation3], 0  ;;  %s2650_s0 = inlined_call_operand.hbm [shape: bf16[1024,128], index: 0, kind: input, shape index: {}]   ;;  %s2651_s1 = inlined_call_operand.hbm [shape: bf16[1,128,128], index: 1, kind: input, shape index: {}]   ;;  %s2652_s2 = inlined_call_operand.vmem [shape: f32[1,1,128], index: 2, kind: input, shape index: {}]   ;;  %s2653_s3 = inlined_call_operand.hbm [shape: f32[1,1,128], index: 3, kind: output, shape index: {0}]   ;;  %s2654_s4 = inlined_call_operand.hbm [shape: f32[1,1,128], index: 4, kind: output, shape index: {1}]  }
   0x1   :  { %11 = vsyncpa [#allocation6], 0 }
   0x2   :  { %12 = vsyncpa [#allocation4], 0 }
   0x3   :  { %13 = vsyncpa [#allocation9], 0  ;;  %s2232_s15 = smov [#allocation2]   ;;  %s2136_s19 = scalar_lea.hbm %s2650_s0, 8192 }
   0x4   :  { %s25_s16 = sshll.u32 %s2232_s15, 4  ;;  %p2137_p0 = scmp.ne.s32.totalorder %s2650_s0, %s2136_s19  ;;  %s26_s16 = int_to_ptr.vmem [resolvable:$true] %s25_s16 }
   0x5   :  { %p2140_p1 = scmp.lt.u32.totalorder %s2136_s19, %s2650_s0 }
   0x7   :  { %p2142_p2 = pnand %p2140_p1, %p2137_p0 }
   0x9   :  { %2145 = shalt.err (!%p2142_p2)
}
   0xa   :  { %s2146_s24 = scalar_lea.vmem %s26_s16, 8192  ;;  %p2151_p4 = scmp.lt.s32.totalorder %s26_s16, %s26_s16 }
   0xb   :  { %p2147_p3 = scmp.ne.s32.totalorder %s26_s16, %s2146_s24  ;;  %p2152_p5 = scmp.lt.s32.totalorder %s2146_s24, %s2146_s24 }
   0xd   :  { %p2153_p6 = por %p2152_p5, %p2151_p4 }
   0xf   :  { %p2154_p7 = pnand %p2153_p6, %p2147_p3 }
  0x11   :  { %2157 = shalt.err (!%p2154_p7)
}
  0x12   :  { %s2233_s25 = smov 64   ;;  %s2234_s26 = smov 4  }
  0x13   :  { %31 = dma.hbm_to_vmem [thread:$0]  %s2650_s0, 8192, %s26_s16, [#allocation3], %s2233_s25, %s2233_s25, %s2234_s26  }
  0x14   :  { %s2235_s29 = smov [#allocation5]   ;;  %s2158_s7 = scalar_lea.hbm %s2651_s1, 1024 }
  0x15   :  { %s37_s30 = sshll.u32 %s2235_s29, 4  ;;  %p2159_p8 = scmp.ne.s32.totalorder %s2651_s1, %s2158_s7  ;;  %s38_s30 = int_to_ptr.vmem [resolvable:$true] %s37_s30 }
  0x16   :  { %p2162_p9 = scmp.lt.u32.totalorder %s2158_s7, %s2651_s1 }
  0x18   :  { %p2164_p10 = pnand %p2162_p9, %p2159_p8 }
  0x1a   :  { %2167 = shalt.err (!%p2164_p10)
}
  0x1b   :  { %s2168_s12 = scalar_lea.vmem %s38_s30, 1024  ;;  %p2173_p12 = scmp.lt.s32.totalorder %s38_s30, %s38_s30 }
  0x1c   :  { %p2169_p11 = scmp.ne.s32.totalorder %s38_s30, %s2168_s12  ;;  %p2174_p13 = scmp.lt.s32.totalorder %s2168_s12, %s2168_s12 }
  0x1e   :  { %p2175_p0 = por %p2174_p13, %p2173_p12 }
  0x20   :  { %p2176_p1 = pnand %p2175_p0, %p2169_p11 }
  0x22   :  { %2179 = shalt.err (!%p2176_p1)
}
  0x23   :  { %43 = dma.hbm_to_vmem [thread:$0]  %s2651_s1, 1024, %s38_s30, [#allocation6], %s2233_s25, %s2233_s25, %s2234_s26  }
  0x24   :  { %2224 = dma.done.wait [#allocation3], 8192  }
  0x25   :  { %2225 = vsyncadd [#allocation3], 4294959104 }
  0x26   :  { %2226 = dma.done.wait [#allocation6], 1024  }
  0x27   :  { %2227 = vsyncadd [#allocation6], 4294966272  ;;  %v2063_v0 = vld [vmem:[#allocation5] sm:$0xff]   ;;  %v2064_v1 = vld [vmem:[#allocation5 + $0x8] sm:$0xff]   ;;  %s2238_s18 = smov [#allocation8]  }
  0x28   :  { %1896 = vmatprep.subr.bf16.mxu0 %v2063_v0  ;;  %2040 = vmatprep.subr.bf16.mxu1 %v2063_v0  ;;  %v2065_v2 = vld [vmem:[#allocation5 + $0x10] sm:$0xff]   ;;  %v2066_v3 = vld [vmem:[#allocation5 + $0x18] sm:$0xff]   ;;  %v2071_v4 = vld [vmem:[#allocation2] sm:$0xff]   ;;  %s1735_s19 = sshll.u32 %s2238_s18, 4  ;;  %s2618_s19 = int_to_ptr.vmem [resolvable:$true] %s1735_s19 }
  0x29   :  { %1897 = vmatpush3.bf16.msra.mxu0 %v2063_v0  ;;  %2048 = vmatpush3.bf16.msra.mxu1 %v2063_v0  ;;  %v2067_v5 = vld [vmem:[#allocation5 + $0x20] sm:$0xff]   ;;  %v2068_v6 = vld [vmem:[#allocation5 + $0x28] sm:$0xff]   ;;  %v2069_v7 = vld [vmem:[#allocation5 + $0x30] sm:$0xff]  }
  0x2a   :  { %1898 = vmatprep.subr.bf16.mxu0 %v2064_v1  ;;  %2041 = vmatprep.subr.bf16.mxu1 %v2064_v1  ;;  %v2070_v8 = vld [vmem:[#allocation5 + $0x38] sm:$0xff]   ;;  %v2072_v9 = vld [vmem:[#allocation2 + $0x8] sm:$0xff]   ;;  %v2073_v10 = vld [vmem:[#allocation2 + $0x10] sm:$0xff]  }
  0x2b   :  { %1912 = vmatprep.mubr.bf16.mxu0 %v2071_v4  ;;  %v2074_v11 = vld [vmem:[#allocation2 + $0x18] sm:$0xff]   ;;  %v2075_v12 = vld [vmem:[#allocation2 + $0x20] sm:$0xff]   ;;  %v2104_v14 = vld [vmem:[#allocation2 + $0x108] sm:$0xff]  }
  0x2c   :  { %v2103_v13 = vld [vmem:[#allocation2 + $0x100] sm:$0xff]   ;;  %v2105_v15 = vld [vmem:[#allocation2 + $0x110] sm:$0xff]   ;;  %v2076_v16 = vld [vmem:[#allocation2 + $0x28] sm:$0xff]  }
  0x2d   :  { %1899 = vmatpush3.bf16.msra.mxu0 %v2064_v1  ;;  %2049 = vmatpush3.bf16.msra.mxu1 %v2064_v1  ;;  %v2077_v17 = vld [vmem:[#allocation2 + $0x30] sm:$0xff]   ;;  %v2106_v18 = vld [vmem:[#allocation2 + $0x118] sm:$0xff]   ;;  %v2107_v19 = vld [vmem:[#allocation2 + $0x120] sm:$0xff]  }
  0x2e   :  { %1900 = vmatprep.subr.bf16.mxu0 %v2065_v2  ;;  %2042 = vmatprep.subr.bf16.mxu1 %v2065_v2  ;;  %v2078_v20 = vld [vmem:[#allocation2 + $0x38] sm:$0xff]   ;;  %v2079_v21 = vld [vmem:[#allocation2 + $0x40] sm:$0xff]   ;;  %v2108_v22 = vld [vmem:[#allocation2 + $0x128] sm:$0xff]  }
  0x2f   :  { %1976 = vmatprep.mubr.bf16.mxu1 %v2103_v13  ;;  %v2109_v23 = vld [vmem:[#allocation2 + $0x130] sm:$0xff]   ;;  %v2080_v24 = vld [vmem:[#allocation2 + $0x48] sm:$0xff]   ;;  %v2110_v26 = vld [vmem:[#allocation2 + $0x138] sm:$0xff]  }
  0x30   :  { %v2081_v25 = vld [vmem:[#allocation2 + $0x50] sm:$0xff]   ;;  %v2111_v27 = vld [vmem:[#allocation2 + $0x140] sm:$0xff]   ;;  %v2082_v28 = vld [vmem:[#allocation2 + $0x58] sm:$0xff]  }
  0x31   :  { %1901 = vmatpush3.bf16.msra.mxu0 %v2065_v2  ;;  %2050 = vmatpush3.bf16.msra.mxu1 %v2065_v2  ;;  %v2083_v29 = vld [vmem:[#allocation2 + $0x60] sm:$0xff]   ;;  %v2112_v30 = vld [vmem:[#allocation2 + $0x148] sm:$0xff]   ;;  %v2113_v31 = vld [vmem:[#allocation2 + $0x150] sm:$0xff]  }
  0x32   :  { %1902 = vmatprep.subr.bf16.mxu0 %v2066_v3  ;;  %2043 = vmatprep.subr.bf16.mxu1 %v2066_v3  ;;  %v2084_v32 = vld [vmem:[#allocation2 + $0x68] sm:$0xff]   ;;  %v2085_v33 = vld [vmem:[#allocation2 + $0x70] sm:$0xff]   ;;  %v2114_v34 = vld [vmem:[#allocation2 + $0x158] sm:$0xff]  }
  0x33   :  { %v2115_v35 = vld [vmem:[#allocation2 + $0x160] sm:$0xff]   ;;  %v2086_v36 = vld [vmem:[#allocation2 + $0x78] sm:$0xff]   ;;  %v2116_v38 = vld [vmem:[#allocation2 + $0x168] sm:$0xff]  }
  0x34   :  { %v2087_v37 = vld [vmem:[#allocation2 + $0x80] sm:$0xff]   ;;  %v2117_v39 = vld [vmem:[#allocation2 + $0x170] sm:$0xff]   ;;  %v2088_v40 = vld [vmem:[#allocation2 + $0x88] sm:$0xff]  }
  0x35   :  { %1903 = vmatpush3.bf16.msra.mxu0 %v2066_v3  ;;  %2051 = vmatpush3.bf16.msra.mxu1 %v2066_v3  ;;  %v2089_v41 = vld [vmem:[#allocation2 + $0x90] sm:$0xff]   ;;  %v2118_v42 = vld [vmem:[#allocation2 + $0x178] sm:$0xff]   ;;  %v2119_v43 = vld [vmem:[#allocation2 + $0x180] sm:$0xff]  }
  0x36   :  { %1904 = vmatprep.subr.bf16.mxu0 %v2067_v5  ;;  %2044 = vmatprep.subr.bf16.mxu1 %v2067_v5  ;;  %v2090_v44 = vld [vmem:[#allocation2 + $0x98] sm:$0xff]   ;;  %v2091_v45 = vld [vmem:[#allocation2 + $0xa0] sm:$0xff]   ;;  %v2120_v46 = vld [vmem:[#allocation2 + $0x188] sm:$0xff]  }
  0x37   :  { %v2121_v47 = vld [vmem:[#allocation2 + $0x190] sm:$0xff]   ;;  %v2092_v48 = vld [vmem:[#allocation2 + $0xa8] sm:$0xff]   ;;  %v2122_v50 = vld [vmem:[#allocation2 + $0x198] sm:$0xff]  }
  0x38   :  { %v2093_v49 = vld [vmem:[#allocation2 + $0xb0] sm:$0xff]   ;;  %v2123_v51 = vld [vmem:[#allocation2 + $0x1a0] sm:$0xff]   ;;  %v2094_v52 = vld [vmem:[#allocation2 + $0xb8] sm:$0xff]  }
  0x39   :  { %1905 = vmatpush3.bf16.msra.mxu0 %v2067_v5  ;;  %2052 = vmatpush3.bf16.msra.mxu1 %v2067_v5  ;;  %v2095_v53 = vld [vmem:[#allocation2 + $0xc0] sm:$0xff]   ;;  %v2124_v54 = vld [vmem:[#allocation2 + $0x1a8] sm:$0xff]   ;;  %v2125_v55 = vld [vmem:[#allocation2 + $0x1b0] sm:$0xff]  }
  0x3a   :  { %1906 = vmatprep.subr.bf16.mxu0 %v2068_v6  ;;  %2045 = vmatprep.subr.bf16.mxu1 %v2068_v6  ;;  %v2096_v56 = vld [vmem:[#allocation2 + $0xc8] sm:$0xff]   ;;  %v2097_v57 = vld [vmem:[#allocation2 + $0xd0] sm:$0xff]   ;;  %v2126_v58 = vld [vmem:[#allocation2 + $0x1b8] sm:$0xff]  }
  0x3b   :  { %v2127_v59 = vld [vmem:[#allocation2 + $0x1c0] sm:$0xff]   ;;  %v2098_v60 = vld [vmem:[#allocation2 + $0xd8] sm:$0xff]   ;;  %v2128_v62 = vld [vmem:[#allocation2 + $0x1c8] sm:$0xff]  }
  0x3c   :  { %v2099_v61 = vld [vmem:[#allocation2 + $0xe0] sm:$0xff]   ;;  %v2129_v63 = vld [vmem:[#allocation2 + $0x1d0] sm:$0xff]   ;;  %v2100_v0 = vld [vmem:[#allocation2 + $0xe8] sm:$0xff]  }
  0x3d   :  { %1907 = vmatpush3.bf16.msra.mxu0 %v2068_v6  ;;  %2053 = vmatpush3.bf16.msra.mxu1 %v2068_v6  ;;  %v2101_v1 = vld [vmem:[#allocation2 + $0xf0] sm:$0xff]   ;;  %v2130_v2 = vld [vmem:[#allocation2 + $0x1d8] sm:$0xff]   ;;  %v2131_v3 = vld [vmem:[#allocation2 + $0x1e0] sm:$0xff]  }
  0x3e   :  { %1908 = vmatprep.subr.bf16.mxu0 %v2069_v7  ;;  %2046 = vmatprep.subr.bf16.mxu1 %v2069_v7  ;;  %v2102_v4 = vld [vmem:[#allocation2 + $0xf8] sm:$0xff]   ;;  %v2132_v5 = vld [vmem:[#allocation2 + $0x1e8] sm:$0xff]   ;;  %v2133_v6 = vld [vmem:[#allocation2 + $0x1f0] sm:$0xff]  }
  0x41   :  { %1909 = vmatpush3.bf16.msra.mxu0 %v2069_v7  ;;  %2054 = vmatpush3.bf16.msra.mxu1 %v2069_v7  ;;  %v2134_v7 = vld [vmem:[#allocation2 + $0x1f8] sm:$0xff]  }
  0x42   :  { %1910 = vmatprep.subr.bf16.mxu0 %v2070_v8  ;;  %2047 = vmatprep.subr.bf16.mxu1 %v2070_v8 }
  0x45   :  { %1911 = vmatpush3.bf16.msra.mxu0 %v2070_v8  ;;  %2055 = vmatpush3.bf16.msra.mxu1 %v2070_v8  ;;  %v2291_v8 = vld [vmem:[%s2652_s2] ss:$0 sm:$0xff] }
  0x48   :  { %1913 = vmatmul.mubr.bf16.vlgmr.msra.gmra.mrb[0].mxu0 %v2072_v9  ;;  %1977 = vmatmul.mubr.bf16.vlgmr.msra.gmra.mrb[0].mxu1 %v2104_v14 }
  0x49   :  { %1916 = vmatprep.mubr.bf16.mxu0 %v2073_v10  ;;  %1980 = vmatprep.mubr.bf16.mxu1 %v2105_v15 }
  0x50   :  { %1917 = vmatmul.mubr.bf16.gmra.mrb[4].mxu0 %v2074_v11  ;;  %1981 = vmatmul.mubr.bf16.gmra.mrb[4].mxu1 %v2106_v18 }
  0x51   :  { %1920 = vmatprep.mubr.bf16.mxu0 %v2075_v12  ;;  %1984 = vmatprep.mubr.bf16.mxu1 %v2107_v19 }
  0x58   :  { %1921 = vmatmul.mubr.bf16.gmra.mrb[8].mxu0 %v2076_v16  ;;  %1985 = vmatmul.mubr.bf16.gmra.mrb[8].mxu1 %v2108_v22 }
  0x59   :  { %1924 = vmatprep.mubr.bf16.mxu0 %v2077_v17  ;;  %1988 = vmatprep.mubr.bf16.mxu1 %v2109_v23 }
  0x60   :  { %1925 = vmatmul.mubr.bf16.gmra.mrb[12].mxu0 %v2078_v20  ;;  %1989 = vmatmul.mubr.bf16.gmra.mrb[12].mxu1 %v2110_v26 }
  0x61   :  { %1928 = vmatprep.mubr.bf16.mxu0 %v2079_v21  ;;  %1992 = vmatprep.mubr.bf16.mxu1 %v2111_v27 }
  0x68   :  { %1929 = vmatmul.mubr.bf16.gmra.mrb[16].mxu0 %v2080_v24  ;;  %1993 = vmatmul.mubr.bf16.gmra.mrb[16].mxu1 %v2112_v30 }
  0x69   :  { %1932 = vmatprep.mubr.bf16.mxu0 %v2081_v25  ;;  %1996 = vmatprep.mubr.bf16.mxu1 %v2113_v31 }
  0x70   :  { %1933 = vmatmul.mubr.bf16.gmra.mrb[20].mxu0 %v2082_v28  ;;  %1997 = vmatmul.mubr.bf16.gmra.mrb[20].mxu1 %v2114_v34 }
  0x71   :  { %1936 = vmatprep.mubr.bf16.mxu0 %v2083_v29  ;;  %2000 = vmatprep.mubr.bf16.mxu1 %v2115_v35 }
  0x78   :  { %1937 = vmatmul.mubr.bf16.gmra.mrb[24].mxu0 %v2084_v32  ;;  %2001 = vmatmul.mubr.bf16.gmra.mrb[24].mxu1 %v2116_v38 }
  0x79   :  { %1940 = vmatprep.mubr.bf16.mxu0 %v2085_v33  ;;  %2004 = vmatprep.mubr.bf16.mxu1 %v2117_v39 }
  0x80   :  { %1941 = vmatmul.mubr.bf16.gmra.mrb[28].mxu0 %v2086_v36  ;;  %2005 = vmatmul.mubr.bf16.gmra.mrb[28].mxu1 %v2118_v42 }
  0x81   :  { %1944 = vmatprep.mubr.bf16.mxu0 %v2087_v37  ;;  %2008 = vmatprep.mubr.bf16.mxu1 %v2119_v43 }
  0x88   :  { %1945 = vmatmul.mubr.bf16.gmra.mrb[32].mxu0 %v2088_v40  ;;  %2009 = vmatmul.mubr.bf16.gmra.mrb[32].mxu1 %v2120_v46 }
  0x89   :  { %1948 = vmatprep.mubr.bf16.mxu0 %v2089_v41  ;;  %2012 = vmatprep.mubr.bf16.mxu1 %v2121_v47 }
  0x90   :  { %1949 = vmatmul.mubr.bf16.gmra.mrb[36].mxu0 %v2090_v44  ;;  %2013 = vmatmul.mubr.bf16.gmra.mrb[36].mxu1 %v2122_v50 }
  0x91   :  { %1952 = vmatprep.mubr.bf16.mxu0 %v2091_v45  ;;  %2016 = vmatprep.mubr.bf16.mxu1 %v2123_v51 }
  0x98   :  { %1953 = vmatmul.mubr.bf16.gmra.mrb[40].mxu0 %v2092_v48  ;;  %2017 = vmatmul.mubr.bf16.gmra.mrb[40].mxu1 %v2124_v54 }
  0x99   :  { %1956 = vmatprep.mubr.bf16.mxu0 %v2093_v49  ;;  %2020 = vmatprep.mubr.bf16.mxu1 %v2125_v55 }
  0xa0   :  { %1957 = vmatmul.mubr.bf16.gmra.mrb[44].mxu0 %v2094_v52  ;;  %2021 = vmatmul.mubr.bf16.gmra.mrb[44].mxu1 %v2126_v58 }
  0xa1   :  { %1960 = vmatprep.mubr.bf16.mxu0 %v2095_v53  ;;  %2024 = vmatprep.mubr.bf16.mxu1 %v2127_v59 }
  0xa8   :  { %1961 = vmatmul.mubr.bf16.gmra.mrb[48].mxu0 %v2096_v56  ;;  %2025 = vmatmul.mubr.bf16.gmra.mrb[48].mxu1 %v2128_v62 }
  0xa9   :  { %1964 = vmatprep.mubr.bf16.mxu0 %v2097_v57  ;;  %2028 = vmatprep.mubr.bf16.mxu1 %v2129_v63 }
  0xb0   :  { %1965 = vmatmul.mubr.bf16.gmra.mrb[52].mxu0 %v2098_v60  ;;  %2029 = vmatmul.mubr.bf16.gmra.mrb[52].mxu1 %v2130_v2 }
  0xb1   :  { %1968 = vmatprep.mubr.bf16.mxu0 %v2099_v61  ;;  %2032 = vmatprep.mubr.bf16.mxu1 %v2131_v3 }
  0xb8   :  { %1969 = vmatmul.mubr.bf16.gmra.mrb[56].mxu0 %v2100_v0  ;;  %2033 = vmatmul.mubr.bf16.gmra.mrb[56].mxu1 %v2132_v5 }
  0xb9   :  { %1972 = vmatprep.mubr.bf16.mxu0 %v2101_v1  ;;  %2036 = vmatprep.mubr.bf16.mxu1 %v2133_v6 }
  0xc0   :  { %1973 = vmatmul.mubr.bf16.gmra.mrb[60].mxu0 %v2102_v4  ;;  %2037 = vmatmul.mubr.bf16.gmra.mrb[60].mxu1 %v2134_v7 }
 0x11b   :  { %v1914_v9 = vpop.f32.mrb[0].mxu0  ;;  %v2298_v27 = vpop.f32.mrb[0].mxu1 }
 0x11c   :  { %v674_v10 = vpop.f32.mrb[1].mxu0  ;;  %v683_v11 = vadd.f32 %v1914_v9, %v2291_v8  ;;  %v2301_v33 = vpop.f32.mrb[1].mxu1 }
 0x11d   :  { %v675_v12 = vadd.f32 %v2291_v8, %v674_v10  ;;  %v1915_v13 = vpop.f32.mrb[2].mxu0  ;;  %v2304_v37 = vpop.f32.mrb[2].mxu1 }
 0x11e   :  { %v686_v14 = vadd.f32 %v1915_v13, %v2291_v8  ;;  %v677_v15 = vpop.f32.mrb[3].mxu0  ;;  %v1187_v18 = vmax.f32 %v683_v11, 0.0  ;;  %v2307_v42 = vpop.f32.mrb[3].mxu1 }
 0x11f   :  { %v1185_v16 = vmax.f32 %v675_v12, 0.0  ;;  %v678_v17 = vadd.f32 %v2291_v8, %v677_v15 }
 0x120   :  { %v1188_v20 = vmax.f32 %v686_v14, 0.0  ;;  %v1458_v28 = vmul.f32 %v1187_v18, %v1187_v18 }
 0x121   :  { %v1186_v19 = vmax.f32 %v678_v17, 0.0  ;;  %v1456_v21 = vmul.f32 %v1185_v16, %v1185_v16 }
 0x122   :  { %v1459_v34 = vmul.f32 %v1188_v20, %v1188_v20 }
 0x123   :  { %v1320_v22 = vadd.f32 %v1186_v19, %v1185_v16  ;;  %v1457_v23 = vmul.f32 %v1186_v19, %v1186_v19  ;;  %v1918_v24 = vpop.f32.mrb[4].mxu0  ;;  %v2310_v55 = vpop.f32.mrb[4].mxu1 }
 0x124   :  { %v699_v25 = vadd.f32 %v1918_v24, %v2291_v8  ;;  %v690_v26 = vpop.f32.mrb[5].mxu0  ;;  %v2313_v61 = vpop.f32.mrb[5].mxu1 }
 0x125   :  { %v1321_v29 = vadd.f32 %v1320_v22, %v1187_v18  ;;  %v1584_v30 = vadd.f32 %v1457_v23, %v1456_v21  ;;  %v691_v31 = vadd.f32 %v2291_v8, %v690_v26  ;;  %v1919_v32 = vpop.f32.mrb[6].mxu0  ;;  %v2316_v1 = vpop.f32.mrb[6].mxu1 }
 0x126   :  { %v702_v35 = vadd.f32 %v1919_v32, %v2291_v8  ;;  %v693_v36 = vpop.f32.mrb[7].mxu0  ;;  %v1191_v43 = vmax.f32 %v699_v25, 0.0  ;;  %v2319_v6 = vpop.f32.mrb[7].mxu1 }
 0x127   :  { %v1322_v38 = vadd.f32 %v1321_v29, %v1188_v20  ;;  %v1585_v39 = vadd.f32 %v1584_v30, %v1458_v28  ;;  %v1189_v40 = vmax.f32 %v691_v31, 0.0  ;;  %v694_v41 = vadd.f32 %v2291_v8, %v693_v36 }
 0x128   :  { %v1192_v48 = vmax.f32 %v702_v35, 0.0  ;;  %v1462_v56 = vmul.f32 %v1191_v43, %v1191_v43 }
 0x129   :  { %v1586_v44 = vadd.f32 %v1585_v39, %v1459_v34  ;;  %v1323_v45 = vadd.f32 %v1322_v38, %v1189_v40  ;;  %v1460_v46 = vmul.f32 %v1189_v40, %v1189_v40  ;;  %v1190_v47 = vmax.f32 %v694_v41, 0.0 }
 0x12a   :  { %v1463_v62 = vmul.f32 %v1192_v48, %v1192_v48 }
 0x12b   :  { %v1587_v49 = vadd.f32 %v1586_v44, %v1460_v46  ;;  %v1324_v50 = vadd.f32 %v1323_v45, %v1190_v47  ;;  %v1461_v51 = vmul.f32 %v1190_v47, %v1190_v47  ;;  %v1922_v52 = vpop.f32.mrb[8].mxu0  ;;  %v2322_v20 = vpop.f32.mrb[8].mxu1 }
 0x12c   :  { %v715_v53 = vadd.f32 %v1922_v52, %v2291_v8  ;;  %v706_v54 = vpop.f32.mrb[9].mxu0  ;;  %v2325_v26 = vpop.f32.mrb[9].mxu1 }
 0x12d   :  { %v1325_v57 = vadd.f32 %v1324_v50, %v1191_v43  ;;  %v1588_v58 = vadd.f32 %v1587_v49, %v1461_v51  ;;  %v707_v59 = vadd.f32 %v2291_v8, %v706_v54  ;;  %v1923_v60 = vpop.f32.mrb[10].mxu0  ;;  %v2328_v31 = vpop.f32.mrb[10].mxu1 }
 0x12e   :  { %v718_v63 = vadd.f32 %v1923_v60, %v2291_v8  ;;  %v709_v0 = vpop.f32.mrb[11].mxu0  ;;  %v1195_v7 = vmax.f32 %v715_v53, 0.0  ;;  %v2331_v38 = vpop.f32.mrb[11].mxu1 }
 0x12f   :  { %v1326_v2 = vadd.f32 %v1325_v57, %v1192_v48  ;;  %v1589_v3 = vadd.f32 %v1588_v58, %v1462_v56  ;;  %v1193_v4 = vmax.f32 %v707_v59, 0.0  ;;  %v710_v5 = vadd.f32 %v2291_v8, %v709_v0 }
 0x130   :  { %v1196_v13 = vmax.f32 %v718_v63, 0.0  ;;  %v1466_v21 = vmul.f32 %v1195_v7, %v1195_v7 }
 0x131   :  { %v1590_v9 = vadd.f32 %v1589_v3, %v1463_v62  ;;  %v1327_v10 = vadd.f32 %v1326_v2, %v1193_v4  ;;  %v1464_v11 = vmul.f32 %v1193_v4, %v1193_v4  ;;  %v1194_v12 = vmax.f32 %v710_v5, 0.0 }
 0x132   :  { %v1467_v28 = vmul.f32 %v1196_v13, %v1196_v13 }
 0x133   :  { %v1591_v14 = vadd.f32 %v1590_v9, %v1464_v11  ;;  %v1328_v15 = vadd.f32 %v1327_v10, %v1194_v12  ;;  %v1465_v16 = vmul.f32 %v1194_v12, %v1194_v12  ;;  %v1926_v17 = vpop.f32.mrb[12].mxu0  ;;  %v2334_v52 = vpop.f32.mrb[12].mxu1 }
 0x134   :  { %v731_v18 = vadd.f32 %v1926_v17, %v2291_v8  ;;  %v722_v19 = vpop.f32.mrb[13].mxu0  ;;  %v2337_v59 = vpop.f32.mrb[13].mxu1 }
 0x135   :  { %v1329_v22 = vadd.f32 %v1328_v15, %v1195_v7  ;;  %v1592_v23 = vadd.f32 %v1591_v14, %v1465_v16  ;;  %v723_v24 = vadd.f32 %v2291_v8, %v722_v19  ;;  %v1927_v25 = vpop.f32.mrb[14].mxu0  ;;  %v2340_v0 = vpop.f32.mrb[14].mxu1 }
 0x136   :  { %v734_v29 = vadd.f32 %v1927_v25, %v2291_v8  ;;  %v725_v30 = vpop.f32.mrb[15].mxu0  ;;  %v1199_v39 = vmax.f32 %v731_v18, 0.0  ;;  %v2343_v7 = vpop.f32.mrb[15].mxu1 }
 0x137   :  { %v1330_v32 = vadd.f32 %v1329_v22, %v1196_v13  ;;  %v1593_v34 = vadd.f32 %v1592_v23, %v1466_v21  ;;  %v1197_v35 = vmax.f32 %v723_v24, 0.0  ;;  %v726_v36 = vadd.f32 %v2291_v8, %v725_v30 }
 0x138   :  { %v1200_v45 = vmax.f32 %v734_v29, 0.0  ;;  %v1470_v53 = vmul.f32 %v1199_v39, %v1199_v39 }
 0x139   :  { %v1594_v40 = vadd.f32 %v1593_v34, %v1467_v28  ;;  %v1331_v41 = vadd.f32 %v1330_v32, %v1197_v35  ;;  %v1468_v43 = vmul.f32 %v1197_v35, %v1197_v35  ;;  %v1198_v44 = vmax.f32 %v726_v36, 0.0 }
 0x13a   :  { %v1471_v60 = vmul.f32 %v1200_v45, %v1200_v45 }
 0x13b   :  { %v1595_v46 = vadd.f32 %v1594_v40, %v1468_v43  ;;  %v1332_v47 = vadd.f32 %v1331_v41, %v1198_v44  ;;  %v1469_v48 = vmul.f32 %v1198_v44, %v1198_v44  ;;  %v1930_v49 = vpop.f32.mrb[16].mxu0  ;;  %v2346_v22 = vpop.f32.mrb[16].mxu1 }
 0x13c   :  { %v747_v50 = vadd.f32 %v1930_v49, %v2291_v8  ;;  %v738_v51 = vpop.f32.mrb[17].mxu0  ;;  %v2349_v30 = vpop.f32.mrb[17].mxu1 }
 0x13d   :  { %v1333_v54 = vadd.f32 %v1332_v47, %v1199_v39  ;;  %v1596_v56 = vadd.f32 %v1595_v46, %v1469_v48  ;;  %v739_v57 = vadd.f32 %v2291_v8, %v738_v51  ;;  %v1931_v58 = vpop.f32.mrb[18].mxu0  ;;  %v2352_v36 = vpop.f32.mrb[18].mxu1 }
 0x13e   :  { %v750_v62 = vadd.f32 %v1931_v58, %v2291_v8  ;;  %v741_v63 = vpop.f32.mrb[19].mxu0  ;;  %v1203_v9 = vmax.f32 %v747_v50, 0.0  ;;  %v2355_v44 = vpop.f32.mrb[19].mxu1 }
 0x13f   :  { %v1334_v2 = vadd.f32 %v1333_v54, %v1200_v45  ;;  %v1597_v3 = vadd.f32 %v1596_v56, %v1470_v53  ;;  %v1201_v4 = vmax.f32 %v739_v57, 0.0  ;;  %v742_v5 = vadd.f32 %v2291_v8, %v741_v63 }
 0x140   :  { %v1204_v14 = vmax.f32 %v750_v62, 0.0  ;;  %v1474_v23 = vmul.f32 %v1203_v9, %v1203_v9 }
 0x141   :  { %v1598_v10 = vadd.f32 %v1597_v3, %v1471_v60  ;;  %v1335_v11 = vadd.f32 %v1334_v2, %v1201_v4  ;;  %v1472_v12 = vmul.f32 %v1201_v4, %v1201_v4  ;;  %v1202_v13 = vmax.f32 %v742_v5, 0.0 }
 0x142   :  { %v1475_v32 = vmul.f32 %v1204_v14, %v1204_v14 }
 0x143   :  { %v1599_v15 = vadd.f32 %v1598_v10, %v1472_v12  ;;  %v1336_v16 = vadd.f32 %v1335_v11, %v1202_v13  ;;  %v1473_v17 = vmul.f32 %v1202_v13, %v1202_v13  ;;  %v1934_v18 = vpop.f32.mrb[20].mxu0  ;;  %v2358_v60 = vpop.f32.mrb[20].mxu1 }
 0x144   :  { %v763_v19 = vadd.f32 %v1934_v18, %v2291_v8  ;;  %v754_v21 = vpop.f32.mrb[21].mxu0  ;;  %v2361_v5 = vpop.f32.mrb[21].mxu1 }
 0x145   :  { %v1337_v24 = vadd.f32 %v1336_v16, %v1203_v9  ;;  %v1600_v25 = vadd.f32 %v1599_v15, %v1473_v17  ;;  %v755_v28 = vadd.f32 %v2291_v8, %v754_v21  ;;  %v1935_v29 = vpop.f32.mrb[22].mxu0  ;;  %v2364_v12 = vpop.f32.mrb[22].mxu1 }
 0x146   :  { %v766_v34 = vadd.f32 %v1935_v29, %v2291_v8  ;;  %v757_v35 = vpop.f32.mrb[23].mxu0  ;;  %v1207_v45 = vmax.f32 %v763_v19, 0.0  ;;  %v2367_v17 = vpop.f32.mrb[23].mxu1 }
 0x147   :  { %v1338_v39 = vadd.f32 %v1337_v24, %v1204_v14  ;;  %v1601_v40 = vadd.f32 %v1600_v25, %v1474_v23  ;;  %v1205_v41 = vmax.f32 %v755_v28, 0.0  ;;  %v758_v43 = vadd.f32 %v2291_v8, %v757_v35 }
 0x148   :  { %v1208_v50 = vmax.f32 %v766_v34, 0.0  ;;  %v1478_v62 = vmul.f32 %v1207_v45, %v1207_v45 }
 0x149   :  { %v1602_v46 = vadd.f32 %v1601_v40, %v1475_v32  ;;  %v1339_v47 = vadd.f32 %v1338_v39, %v1205_v41  ;;  %v1476_v48 = vmul.f32 %v1205_v41, %v1205_v41  ;;  %v1206_v49 = vmax.f32 %v758_v43, 0.0 }
 0x14a   :  { %v1479_v9 = vmul.f32 %v1208_v50, %v1208_v50 }
 0x14b   :  { %v1603_v51 = vadd.f32 %v1602_v46, %v1476_v48  ;;  %v1340_v53 = vadd.f32 %v1339_v47, %v1206_v49  ;;  %v1477_v54 = vmul.f32 %v1206_v49, %v1206_v49  ;;  %v1938_v56 = vpop.f32.mrb[24].mxu0  ;;  %v2370_v40 = vpop.f32.mrb[24].mxu1 }
 0x14c   :  { %v779_v57 = vadd.f32 %v1938_v56, %v2291_v8  ;;  %v770_v58 = vpop.f32.mrb[25].mxu0  ;;  %v2373_v48 = vpop.f32.mrb[25].mxu1 }
 0x14d   :  { %v1341_v63 = vadd.f32 %v1340_v53, %v1207_v45  ;;  %v1604_v2 = vadd.f32 %v1603_v51, %v1477_v54  ;;  %v771_v3 = vadd.f32 %v2291_v8, %v770_v58  ;;  %v1939_v4 = vpop.f32.mrb[26].mxu0  ;;  %v2376_v53 = vpop.f32.mrb[26].mxu1 }
 0x14e   :  { %v782_v10 = vadd.f32 %v1939_v4, %v2291_v8  ;;  %v773_v11 = vpop.f32.mrb[27].mxu0  ;;  %v1211_v18 = vmax.f32 %v779_v57, 0.0 }
 0x14f   :  { %v1342_v13 = vadd.f32 %v1341_v63, %v1208_v50  ;;  %v1605_v14 = vadd.f32 %v1604_v2, %v1478_v62  ;;  %v1209_v15 = vmax.f32 %v771_v3, 0.0  ;;  %v774_v16 = vadd.f32 %v2291_v8, %v773_v11  ;;  %v2379_v62 = vpop.f32.mrb[27].mxu1 }
 0x150   :  { %v1212_v25 = vmax.f32 %v782_v10, 0.0  ;;  %v1482_v41 = vmul.f32 %v1211_v18, %v1211_v18 }
 0x151   :  { %v1606_v19 = vadd.f32 %v1605_v14, %v1479_v9  ;;  %v1343_v21 = vadd.f32 %v1342_v13, %v1209_v15  ;;  %v1480_v23 = vmul.f32 %v1209_v15, %v1209_v15  ;;  %v1210_v24 = vmax.f32 %v774_v16, 0.0 }
 0x152   :  { %v1483_v49 = vmul.f32 %v1212_v25, %v1212_v25 }
 0x153   :  { %v1607_v28 = vadd.f32 %v1606_v19, %v1480_v23  ;;  %v1344_v29 = vadd.f32 %v1343_v21, %v1210_v24  ;;  %v1481_v32 = vmul.f32 %v1210_v24, %v1210_v24  ;;  %v1942_v34 = vpop.f32.mrb[28].mxu0  ;;  %v2382_v19 = vpop.f32.mrb[28].mxu1 }
 0x154   :  { %v795_v35 = vadd.f32 %v1942_v34, %v2291_v8  ;;  %v786_v39 = vpop.f32.mrb[29].mxu0 }
 0x155   :  { %v1345_v43 = vadd.f32 %v1344_v29, %v1211_v18  ;;  %v1608_v45 = vadd.f32 %v1607_v28, %v1481_v32  ;;  %v787_v46 = vadd.f32 %v2291_v8, %v786_v39  ;;  %v1943_v47 = vpop.f32.mrb[30].mxu0  ;;  %v2385_v29 = vpop.f32.mrb[29].mxu1 }
 0x156   :  { %v798_v50 = vadd.f32 %v1943_v47, %v2291_v8  ;;  %v789_v51 = vpop.f32.mrb[31].mxu0  ;;  %v1215_v63 = vmax.f32 %v795_v35, 0.0  ;;  %v2388_v39 = vpop.f32.mrb[30].mxu1 }
 0x157   :  { %v1346_v54 = vadd.f32 %v1345_v43, %v1212_v25  ;;  %v1609_v56 = vadd.f32 %v1608_v45, %v1482_v41  ;;  %v1213_v57 = vmax.f32 %v787_v46, 0.0  ;;  %v790_v58 = vadd.f32 %v2291_v8, %v789_v51  ;;  %v2391_v47 = vpop.f32.mrb[31].mxu1 }
 0x158   :  { %v1216_v10 = vmax.f32 %v798_v50, 0.0  ;;  %v1486_v21 = vmul.f32 %v1215_v63, %v1215_v63 }
 0x159   :  { %v1610_v2 = vadd.f32 %v1609_v56, %v1483_v49  ;;  %v1347_v3 = vadd.f32 %v1346_v54, %v1213_v57  ;;  %v1484_v4 = vmul.f32 %v1213_v57, %v1213_v57  ;;  %v1214_v9 = vmax.f32 %v790_v58, 0.0 }
 0x15a   :  { %v1487_v32 = vmul.f32 %v1216_v10, %v1216_v10 }
 0x15b   :  { %v1611_v11 = vadd.f32 %v1610_v2, %v1484_v4  ;;  %v1348_v13 = vadd.f32 %v1347_v3, %v1214_v9  ;;  %v1485_v14 = vmul.f32 %v1214_v9, %v1214_v9  ;;  %v1946_v15 = vpop.f32.mrb[32].mxu0 }
 0x15c   :  { %v811_v16 = vadd.f32 %v1946_v15, %v2291_v8  ;;  %v802_v18 = vpop.f32.mrb[33].mxu0 }
 0x15d   :  { %v1349_v23 = vadd.f32 %v1348_v13, %v1215_v63  ;;  %v1612_v24 = vadd.f32 %v1611_v11, %v1485_v14  ;;  %v803_v25 = vadd.f32 %v2291_v8, %v802_v18  ;;  %v1947_v28 = vpop.f32.mrb[34].mxu0 }
 0x15e   :  { %v814_v34 = vadd.f32 %v1947_v28, %v2291_v8  ;;  %v805_v35 = vpop.f32.mrb[35].mxu0  ;;  %v1219_v49 = vmax.f32 %v811_v16, 0.0 }
 0x15f   :  { %v1350_v41 = vadd.f32 %v1349_v23, %v1216_v10  ;;  %v1613_v43 = vadd.f32 %v1612_v24, %v1486_v21  ;;  %v1217_v45 = vmax.f32 %v803_v25, 0.0  ;;  %v806_v46 = vadd.f32 %v2291_v8, %v805_v35  ;;  %v2394_v10 = vpop.f32.mrb[32].mxu1 }
 0x160   :  { %v1220_v57 = vmax.f32 %v814_v34, 0.0  ;;  %v1490_v11 = vmul.f32 %v1219_v49, %v1219_v49  ;;  %v2397_v18 = vpop.f32.mrb[33].mxu1 }
 0x161   :  { %v1614_v50 = vadd.f32 %v1613_v43, %v1487_v32  ;;  %v1351_v51 = vadd.f32 %v1350_v41, %v1217_v45  ;;  %v1488_v54 = vmul.f32 %v1217_v45, %v1217_v45  ;;  %v1218_v56 = vmax.f32 %v806_v46, 0.0  ;;  %v2400_v25 = vpop.f32.mrb[34].mxu1 }
 0x162   :  { %v1491_v21 = vmul.f32 %v1220_v57, %v1220_v57  ;;  %v2403_v41 = vpop.f32.mrb[35].mxu1 }
 0x163   :  { %v1615_v58 = vadd.f32 %v1614_v50, %v1488_v54  ;;  %v1352_v63 = vadd.f32 %v1351_v51, %v1218_v56  ;;  %v1489_v2 = vmul.f32 %v1218_v56, %v1218_v56  ;;  %v1950_v3 = vpop.f32.mrb[36].mxu0 }
 0x164   :  { %v827_v4 = vadd.f32 %v1950_v3, %v2291_v8  ;;  %v818_v9 = vpop.f32.mrb[37].mxu0 }
 0x165   :  { %v1353_v13 = vadd.f32 %v1352_v63, %v1219_v49  ;;  %v1616_v14 = vadd.f32 %v1615_v58, %v1489_v2  ;;  %v819_v15 = vadd.f32 %v2291_v8, %v818_v9  ;;  %v1951_v16 = vpop.f32.mrb[38].mxu0 }
 0x166   :  { %v830_v23 = vadd.f32 %v1951_v16, %v2291_v8  ;;  %v821_v24 = vpop.f32.mrb[39].mxu0  ;;  %v1223_v43 = vmax.f32 %v827_v4, 0.0 }
 0x167   :  { %v1354_v28 = vadd.f32 %v1353_v13, %v1220_v57  ;;  %v1617_v32 = vadd.f32 %v1616_v14, %v1490_v11  ;;  %v1221_v34 = vmax.f32 %v819_v15, 0.0  ;;  %v822_v35 = vadd.f32 %v2291_v8, %v821_v24  ;;  %v2406_v57 = vpop.f32.mrb[36].mxu1 }
 0x168   :  { %v1224_v51 = vmax.f32 %v830_v23, 0.0  ;;  %2655 = vst [vmem:[#allocation14_spill] sm:$0xff] %v2406_v57  ;;  %v1494_v9 = vmul.f32 %v1223_v43, %v1223_v43  ;;  %v2409_v15 = vpop.f32.mrb[37].mxu1 }
 0x169   :  { %v1618_v45 = vadd.f32 %v1617_v32, %v1491_v21  ;;  %v1355_v46 = vadd.f32 %v1354_v28, %v1221_v34  ;;  %v1492_v49 = vmul.f32 %v1221_v34, %v1221_v34  ;;  %v1222_v50 = vmax.f32 %v822_v35, 0.0  ;;  %v2412_v24 = vpop.f32.mrb[38].mxu1 }
 0x16a   :  { %v1495_v16 = vmul.f32 %v1224_v51, %v1224_v51  ;;  %2656 = vst [vmem:[#allocation15_spill] sm:$0xff] %v2412_v24 }
 0x16b   :  { %v1619_v54 = vadd.f32 %v1618_v45, %v1492_v49  ;;  %v1356_v56 = vadd.f32 %v1355_v46, %v1222_v50  ;;  %v1493_v58 = vmul.f32 %v1222_v50, %v1222_v50  ;;  %v1954_v63 = vpop.f32.mrb[40].mxu0  ;;  %v2415_v45 = vpop.f32.mrb[39].mxu1 }
 0x16c   :  { %v843_v2 = vadd.f32 %v1954_v63, %v2291_v8  ;;  %v834_v3 = vpop.f32.mrb[41].mxu0  ;;  %2657 = vst [vmem:[#allocation16_spill] sm:$0xff] %v2415_v45 }
 0x16d   :  { %v1357_v11 = vadd.f32 %v1356_v56, %v1223_v43  ;;  %v1620_v13 = vadd.f32 %v1619_v54, %v1493_v58  ;;  %v835_v14 = vadd.f32 %v2291_v8, %v834_v3  ;;  %v1955_v4 = vpop.f32.mrb[42].mxu0 }
 0x16e   :  { %v846_v21 = vadd.f32 %v1955_v4, %v2291_v8  ;;  %v837_v23 = vpop.f32.mrb[43].mxu0  ;;  %v1227_v43 = vmax.f32 %v843_v2, 0.0 }
 0x16f   :  { %v1358_v28 = vadd.f32 %v1357_v11, %v1224_v51  ;;  %v1621_v32 = vadd.f32 %v1620_v13, %v1494_v9  ;;  %v1225_v34 = vmax.f32 %v835_v14, 0.0  ;;  %v838_v35 = vadd.f32 %v2291_v8, %v837_v23  ;;  %v2418_v51 = vpop.f32.mrb[40].mxu1 }
 0x170   :  { %v1228_v56 = vmax.f32 %v846_v21, 0.0  ;;  %2658 = vst [vmem:[#allocation17_spill] sm:$0xff] %v2418_v51  ;;  %v1498_v9 = vmul.f32 %v1227_v43, %v1227_v43 }
 0x171   :  { %v1622_v46 = vadd.f32 %v1621_v32, %v1495_v16  ;;  %v1359_v49 = vadd.f32 %v1358_v28, %v1225_v34  ;;  %v1496_v50 = vmul.f32 %v1225_v34, %v1225_v34  ;;  %v1226_v54 = vmax.f32 %v838_v35, 0.0  ;;  %v2421_v16 = vpop.f32.mrb[41].mxu1 }
 0x172   :  { %2659 = vst [vmem:[#allocation18_spill] sm:$0xff] %v2421_v16  ;;  %v1499_v23 = vmul.f32 %v1228_v56, %v1228_v56  ;;  %v2424_v32 = vpop.f32.mrb[42].mxu1 }
 0x173   :  { %v1623_v58 = vadd.f32 %v1622_v46, %v1496_v50  ;;  %v1360_v63 = vadd.f32 %v1359_v49, %v1226_v54  ;;  %v1497_v3 = vmul.f32 %v1226_v54, %v1226_v54  ;;  %v1958_v4 = vpop.f32.mrb[44].mxu0  ;;  %2660 = vst [vmem:[#allocation19_spill] sm:$0xff] %v2424_v32  ;;  %v2427_v50 = vpop.f32.mrb[43].mxu1 }
 0x174   :  { %v859_v57 = vadd.f32 %v1958_v4, %v2291_v8  ;;  %v850_v24 = vpop.f32.mrb[45].mxu0  ;;  %2661 = vst [vmem:[#allocation20_spill] sm:$0xff] %v2427_v50 }
 0x175   :  { %v1361_v11 = vadd.f32 %v1360_v63, %v1227_v43  ;;  %v1624_v13 = vadd.f32 %v1623_v58, %v1497_v3  ;;  %v851_v14 = vadd.f32 %v2291_v8, %v850_v24  ;;  %v1959_v2 = vpop.f32.mrb[46].mxu0 }
 0x176   :  { %v862_v21 = vadd.f32 %v1959_v2, %v2291_v8  ;;  %v853_v28 = vpop.f32.mrb[47].mxu0  ;;  %v1231_v43 = vmax.f32 %v859_v57, 0.0 }
 0x177   :  { %v1362_v34 = vadd.f32 %v1361_v11, %v1228_v56  ;;  %v1625_v35 = vadd.f32 %v1624_v13, %v1498_v9  ;;  %v1229_v46 = vmax.f32 %v851_v14, 0.0  ;;  %v854_v49 = vadd.f32 %v2291_v8, %v853_v28  ;;  %v2430_v56 = vpop.f32.mrb[44].mxu1 }
 0x178   :  { %v1232_v3 = vmax.f32 %v862_v21, 0.0  ;;  %2662 = vst [vmem:[#allocation21_spill] sm:$0xff] %v2430_v56  ;;  %v1502_v9 = vmul.f32 %v1231_v43, %v1231_v43 }
 0x179   :  { %v1626_v54 = vadd.f32 %v1625_v35, %v1499_v23  ;;  %v1363_v58 = vadd.f32 %v1362_v34, %v1229_v46  ;;  %v1500_v24 = vmul.f32 %v1229_v46, %v1229_v46  ;;  %v1230_v63 = vmax.f32 %v854_v49, 0.0  ;;  %v2433_v23 = vpop.f32.mrb[45].mxu1 }
 0x17a   :  { %2663 = vst [vmem:[#allocation22_spill] sm:$0xff] %v2433_v23  ;;  %v1503_v28 = vmul.f32 %v1232_v3, %v1232_v3  ;;  %v2436_v35 = vpop.f32.mrb[46].mxu1 }
 0x17b   :  { %v1627_v4 = vadd.f32 %v1626_v54, %v1500_v24  ;;  %v1364_v51 = vadd.f32 %v1363_v58, %v1230_v63  ;;  %v1501_v16 = vmul.f32 %v1230_v63, %v1230_v63  ;;  %v1962_v2 = vpop.f32.mrb[48].mxu0  ;;  %2664 = vst [vmem:[#allocation23_spill] sm:$0xff] %v2436_v35  ;;  %v2439_v24 = vpop.f32.mrb[47].mxu1 }
 0x17c   :  { %v875_v45 = vadd.f32 %v1962_v2, %v2291_v8  ;;  %v866_v32 = vpop.f32.mrb[49].mxu0  ;;  %2665 = vst [vmem:[#allocation24_spill] sm:$0xff] %v2439_v24 }
 0x17d   :  { %v1365_v11 = vadd.f32 %v1364_v51, %v1231_v43  ;;  %v1628_v13 = vadd.f32 %v1627_v4, %v1501_v16  ;;  %v867_v14 = vadd.f32 %v2291_v8, %v866_v32  ;;  %v1963_v57 = vpop.f32.mrb[50].mxu0 }
 0x17e   :  { %v878_v21 = vadd.f32 %v1963_v57, %v2291_v8  ;;  %v869_v34 = vpop.f32.mrb[51].mxu0  ;;  %v1235_v51 = vmax.f32 %v875_v45, 0.0 }
 0x17f   :  { %v1366_v46 = vadd.f32 %v1365_v11, %v1232_v3  ;;  %v1629_v49 = vadd.f32 %v1628_v13, %v1502_v9  ;;  %v1233_v54 = vmax.f32 %v867_v14, 0.0  ;;  %v870_v58 = vadd.f32 %v2291_v8, %v869_v34  ;;  %v2442_v3 = vpop.f32.mrb[48].mxu1 }
 0x180   :  { %v1236_v4 = vmax.f32 %v878_v21, 0.0  ;;  %2666 = vst [vmem:[#allocation25_spill] sm:$0xff] %v2442_v3  ;;  %v1506_v9 = vmul.f32 %v1235_v51, %v1235_v51 }
 0x181   :  { %v1630_v16 = vadd.f32 %v1629_v49, %v1503_v28  ;;  %v1367_v43 = vadd.f32 %v1366_v46, %v1233_v54  ;;  %v1504_v32 = vmul.f32 %v1233_v54, %v1233_v54  ;;  %v1234_v63 = vmax.f32 %v870_v58, 0.0  ;;  %v2445_v28 = vpop.f32.mrb[49].mxu1 }
 0x182   :  { %2667 = vst [vmem:[#allocation26_spill] sm:$0xff] %v2445_v28  ;;  %v1507_v34 = vmul.f32 %v1236_v4, %v1236_v4  ;;  %v2448_v49 = vpop.f32.mrb[50].mxu1 }
 0x183   :  { %v1631_v2 = vadd.f32 %v1630_v16, %v1504_v32  ;;  %v1368_v56 = vadd.f32 %v1367_v43, %v1234_v63  ;;  %v1505_v23 = vmul.f32 %v1234_v63, %v1234_v63  ;;  %v1966_v57 = vpop.f32.mrb[52].mxu0  ;;  %2668 = vst [vmem:[#allocation27_spill] sm:$0xff] %v2448_v49  ;;  %v2451_v32 = vpop.f32.mrb[51].mxu1 }
 0x184   :  { %v891_v50 = vadd.f32 %v1966_v57, %v2291_v8  ;;  %v882_v35 = vpop.f32.mrb[53].mxu0  ;;  %2669 = vst [vmem:[#allocation28_spill] sm:$0xff] %v2451_v32 }
 0x185   :  { %v1369_v11 = vadd.f32 %v1368_v56, %v1235_v51  ;;  %v1632_v13 = vadd.f32 %v1631_v2, %v1505_v23  ;;  %v883_v14 = vadd.f32 %v2291_v8, %v882_v35  ;;  %v1967_v45 = vpop.f32.mrb[54].mxu0 }
 0x186   :  { %v894_v21 = vadd.f32 %v1967_v45, %v2291_v8  ;;  %v885_v46 = vpop.f32.mrb[55].mxu0  ;;  %v1239_v56 = vmax.f32 %v891_v50, 0.0 }
 0x187   :  { %v1370_v54 = vadd.f32 %v1369_v11, %v1236_v4  ;;  %v1633_v58 = vadd.f32 %v1632_v13, %v1506_v9  ;;  %v1237_v16 = vmax.f32 %v883_v14, 0.0  ;;  %v886_v43 = vadd.f32 %v2291_v8, %v885_v46  ;;  %v2454_v4 = vpop.f32.mrb[52].mxu1 }
 0x188   :  { %v1240_v2 = vmax.f32 %v894_v21, 0.0  ;;  %2670 = vst [vmem:[#allocation29_spill] sm:$0xff] %v2454_v4  ;;  %v1510_v9 = vmul.f32 %v1239_v56, %v1239_v56 }
 0x189   :  { %v1634_v23 = vadd.f32 %v1633_v58, %v1507_v34  ;;  %v1371_v51 = vadd.f32 %v1370_v54, %v1237_v16  ;;  %v1508_v35 = vmul.f32 %v1237_v16, %v1237_v16  ;;  %v1238_v63 = vmax.f32 %v886_v43, 0.0  ;;  %v2457_v34 = vpop.f32.mrb[53].mxu1 }
 0x18a   :  { %2671 = vst [vmem:[#allocation30_spill] sm:$0xff] %v2457_v34  ;;  %v1511_v46 = vmul.f32 %v1240_v2, %v1240_v2  ;;  %v2460_v58 = vpop.f32.mrb[54].mxu1 }
 0x18b   :  { %v1635_v57 = vadd.f32 %v1634_v23, %v1508_v35  ;;  %v1372_v3 = vadd.f32 %v1371_v51, %v1238_v63  ;;  %v1509_v28 = vmul.f32 %v1238_v63, %v1238_v63  ;;  %v1970_v45 = vpop.f32.mrb[56].mxu0  ;;  %2672 = vst [vmem:[#allocation31_spill] sm:$0xff] %v2460_v58  ;;  %v2463_v35 = vpop.f32.mrb[55].mxu1 }
 0x18c   :  { %v907_v24 = vadd.f32 %v1970_v45, %v2291_v8  ;;  %v898_v49 = vpop.f32.mrb[57].mxu0 }
 0x18d   :  { %v1373_v11 = vadd.f32 %v1372_v3, %v1239_v56  ;;  %v1636_v13 = vadd.f32 %v1635_v57, %v1509_v28  ;;  %v899_v14 = vadd.f32 %v2291_v8, %v898_v49  ;;  %v1971_v50 = vpop.f32.mrb[58].mxu0 }
 0x18e   :  { %v910_v21 = vadd.f32 %v1971_v50, %v2291_v8  ;;  %v901_v54 = vpop.f32.mrb[59].mxu0  ;;  %v1243_v3 = vmax.f32 %v907_v24, 0.0 }
 0x18f   :  { %v1374_v16 = vadd.f32 %v1373_v11, %v1240_v2  ;;  %v1637_v43 = vadd.f32 %v1636_v13, %v1510_v9  ;;  %v1241_v23 = vmax.f32 %v899_v14, 0.0  ;;  %v902_v51 = vadd.f32 %v2291_v8, %v901_v54  ;;  %v2466_v2 = vpop.f32.mrb[56].mxu1 }
 0x190   :  { %v1244_v57 = vmax.f32 %v910_v21, 0.0  ;;  %2673 = vst [vmem:[#allocation32_spill] sm:$0xff] %v2466_v2  ;;  %v1514_v9 = vmul.f32 %v1243_v3, %v1243_v3 }
 0x191   :  { %v1638_v28 = vadd.f32 %v1637_v43, %v1511_v46  ;;  %v1375_v56 = vadd.f32 %v1374_v16, %v1241_v23  ;;  %v1512_v49 = vmul.f32 %v1241_v23, %v1241_v23  ;;  %v1242_v63 = vmax.f32 %v902_v51, 0.0  ;;  %v2469_v46 = vpop.f32.mrb[57].mxu1 }
 0x192   :  { %2674 = vst [vmem:[#allocation33_spill] sm:$0xff] %v2469_v46  ;;  %v1515_v54 = vmul.f32 %v1244_v57, %v1244_v57  ;;  %v931_v43 = vadd.f32 %v2291_v8, %v2301_v33  ;;  %v2474_v23 = vpop.f32.mrb[58].mxu1 }
 0x193   :  { %v1639_v45 = vadd.f32 %v1638_v28, %v1512_v49  ;;  %v1376_v4 = vadd.f32 %v1375_v56, %v1242_v63  ;;  %v1513_v34 = vmul.f32 %v1242_v63, %v1242_v63  ;;  %v1974_v50 = vpop.f32.mrb[60].mxu0  ;;  %2675 = vst [vmem:[#allocation34_spill] sm:$0xff] %v2474_v23 }
 0x194   :  { %v923_v32 = vadd.f32 %v1974_v50, %v2291_v8  ;;  %v914_v58 = vpop.f32.mrb[61].mxu0  ;;  %v1249_v50 = vmax.f32 %v931_v43, 0.0 }
 0x195   :  { %v1377_v11 = vadd.f32 %v1376_v4, %v1243_v3  ;;  %v1640_v13 = vadd.f32 %v1639_v45, %v1513_v34  ;;  %v915_v14 = vadd.f32 %v2291_v8, %v914_v58  ;;  %v1975_v24 = vpop.f32.mrb[62].mxu0  ;;  %v2477_v34 = vpop.f32.mrb[59].mxu1 }
 0x196   :  { %v926_v21 = vadd.f32 %v1975_v24, %v2291_v8  ;;  %v917_v16 = vpop.f32.mrb[63].mxu0  ;;  %v1247_v58 = vmax.f32 %v923_v32, 0.0  ;;  %v934_v24 = vadd.f32 %v2291_v8, %v2307_v42  ;;  %v939_v32 = vadd.f32 %v2298_v27, %v2291_v8 }
 0x197   :  { %v1378_v51 = vadd.f32 %v1377_v11, %v1244_v57  ;;  %v1641_v28 = vadd.f32 %v1640_v13, %v1514_v9  ;;  %v1245_v56 = vmax.f32 %v915_v14, 0.0  ;;  %v918_v4 = vadd.f32 %v2291_v8, %v917_v16  ;;  %v2481_v57 = vpop.f32.mrb[60].mxu1 }
 0x198   :  { %v1248_v33 = vmax.f32 %v926_v21, 0.0  ;;  %v1518_v9 = vmul.f32 %v1247_v58, %v1247_v58  ;;  %v2485_v14 = vpop.f32.mrb[61].mxu1  ;;  %v942_v16 = vadd.f32 %v2304_v37, %v2291_v8  ;;  %v1250_v43 = vmax.f32 %v934_v24, 0.0 }
 0x199   :  { %v1642_v3 = vadd.f32 %v1641_v28, %v1515_v54  ;;  %v1379_v49 = vadd.f32 %v1378_v51, %v1245_v56  ;;  %v1516_v63 = vmul.f32 %v1245_v56, %v1245_v56  ;;  %v1246_v45 = vmax.f32 %v918_v4, 0.0  ;;  %v2489_v42 = vpop.f32.mrb[62].mxu1 }
 0x19a   :  { %v1520_v54 = vmul.f32 %v1249_v50, %v1249_v50  ;;  %v1519_v21 = vmul.f32 %v1248_v33, %v1248_v33  ;;  %v947_v56 = vadd.f32 %v2291_v8, %v2313_v61  ;;  %v1252_v4 = vmax.f32 %v942_v16, 0.0 }
 0x19b   :  { %v1643_v2 = vadd.f32 %v1642_v3, %v1516_v63  ;;  %v1380_v46 = vadd.f32 %v1379_v49, %v1246_v45  ;;  %v1517_v23 = vmul.f32 %v1246_v45, %v1246_v45  ;;  %v1521_v49 = vmul.f32 %v1250_v43, %v1250_v43 }
 0x19c   :  { %v1253_v63 = vmax.f32 %v947_v56, 0.0  ;;  %v2236_v61 = vmov 0.0   ;;  %v963_v16 = vadd.f32 %v2291_v8, %v2325_v26  ;;  %v974_v26 = vadd.f32 %v2328_v31, %v2291_v8 }
 0x19d   :  { %v1381_v11 = vadd.f32 %v1380_v46, %v1247_v58  ;;  %v1644_v13 = vadd.f32 %v1643_v2, %v1517_v23  ;;  %v2493_v46 = vpop.f32.mrb[63].mxu1  ;;  %v1251_v23 = vmax.f32 %v939_v32, 0.0  ;;  %v950_v58 = vadd.f32 %v2291_v8, %v2319_v6  ;;  %1317 = vst [vmem:[#allocation7] sm:$0x1] %v2236_v61  ;;  %1318 = vst [vmem:[#allocation8] sm:$0x1] %v2236_v61 }
 0x19f   :  { %v1382_v51 = vadd.f32 %v1381_v11, %v1248_v33  ;;  %v1645_v28 = vadd.f32 %v1644_v13, %v1518_v9  ;;  %v1522_v45 = vmul.f32 %v1251_v23, %v1251_v23  ;;  %v955_v9 = vadd.f32 %v2310_v55, %v2291_v8 }
 0x1a0   :  { %v1523_v11 = vmul.f32 %v1252_v4, %v1252_v4  ;;  %v1254_v13 = vmax.f32 %v950_v58, 0.0  ;;  %v966_v55 = vadd.f32 %v2291_v8, %v2331_v38  ;;  %v979_v38 = vadd.f32 %v2291_v8, %v2337_v59 }
 0x1a1   :  { %v1646_v2 = vadd.f32 %v1645_v28, %v1519_v21  ;;  %v1383_v27 = vadd.f32 %v1382_v51, %v1249_v50  ;;  %v958_v50 = vadd.f32 %v2316_v1, %v2291_v8  ;;  %v990_v59 = vadd.f32 %v2340_v0, %v2291_v8 }
 0x1a3   :  { %v1647_v3 = vadd.f32 %v1646_v2, %v1520_v54  ;;  %v1384_v37 = vadd.f32 %v1383_v27, %v1250_v43  ;;  %v1524_v54 = vmul.f32 %v1253_v63, %v1253_v63  ;;  %v1255_v43 = vmax.f32 %v955_v9, 0.0 }
 0x1a4   :  { %v1256_v28 = vmax.f32 %v958_v50, 0.0  ;;  %v1257_v27 = vmax.f32 %v963_v16, 0.0  ;;  %v982_v50 = vadd.f32 %v2291_v8, %v2343_v7  ;;  %v2520_v7 = vld [vmem:[%s2652_s2] ss:$0 sm:$0xff]  ;;  %s2237_s2 = smov [#allocation7]  }
 0x1a5   :  { %v1385_v24 = vadd.f32 %v1384_v37, %v1251_v23  ;;  %v1648_v33 = vadd.f32 %v1647_v3, %v1521_v49  ;;  %v1525_v23 = vmul.f32 %v1254_v13, %v1254_v13  ;;  %v1526_v3 = vmul.f32 %v1255_v43, %v1255_v43  ;;  %s1725_s17 = sshll.u32 %s2237_s2, 4  ;;  %s1726_s17 = int_to_ptr.vmem [resolvable:$true] %s1725_s17 }
 0x1a6   :  { %v1527_v37 = vmul.f32 %v1256_v28, %v1256_v28  ;;  %v1258_v49 = vmax.f32 %v966_v55, 0.0  ;;  %s2180_s20 = scalar_lea.vmem %s1726_s17, 16  ;;  %s2184_s21 = scalar_lea.vmem %s1726_s17, 32 }
 0x1a7   :  { %v1649_v32 = vadd.f32 %v1648_v33, %v1522_v45  ;;  %v1386_v6 = vadd.f32 %v1385_v24, %v1252_v4  ;;  %v971_v4 = vadd.f32 %v2322_v20, %v2291_v8  ;;  %v1528_v24 = vmul.f32 %v1257_v27, %v1257_v27  ;;  %p2181_p2 = scmp.ne.s32.totalorder %s1726_s17, %s2180_s20  ;;  %p2185_p3 = scmp.lt.s32.totalorder %s1726_s17, %s1726_s17 }
 0x1a8   :  { %p2186_p4 = scmp.lt.s32.totalorder %s2184_s21, %s2180_s20 }
 0x1a9   :  { %v1387_v21 = vadd.f32 %v1386_v6, %v1253_v63  ;;  %v1650_v51 = vadd.f32 %v1649_v32, %v1523_v11  ;;  %v1259_v33 = vmax.f32 %v971_v4, 0.0  ;;  %v1260_v11 = vmax.f32 %v974_v26, 0.0 }
 0x1aa   :  { %v1529_v32 = vmul.f32 %v1258_v49, %v1258_v49  ;;  %v1261_v6 = vmax.f32 %v979_v38, 0.0  ;;  %p2187_p5 = por %p2186_p4, %p2185_p3 }
 0x1ab   :  { %v1651_v56 = vadd.f32 %v1650_v51, %v1524_v54  ;;  %v1388_v2 = vadd.f32 %v1387_v21, %v1254_v13  ;;  %v1530_v54 = vmul.f32 %v1259_v33, %v1259_v33  ;;  %v1531_v21 = vmul.f32 %v1260_v11, %v1260_v11 }
 0x1ac   :  { %v1262_v51 = vmax.f32 %v982_v50, 0.0  ;;  %p2188_p6 = pnand %p2187_p5, %p2181_p2 }
 0x1ad   :  { %v1389_v1 = vadd.f32 %v1388_v2, %v1255_v43  ;;  %v1652_v58 = vadd.f32 %v1651_v56, %v1525_v23  ;;  %v987_v43 = vadd.f32 %v2334_v52, %v2291_v8  ;;  %v1532_v56 = vmul.f32 %v1261_v6, %v1261_v6 }
 0x1ae   :  { %v995_v2 = vadd.f32 %v2520_v7, %v2349_v30  ;;  %v1264_v52 = vmax.f32 %v990_v59, 0.0  ;;  %v1006_v30 = vadd.f32 %v2520_v7, %v2352_v36 }
 0x1af   :  { %v1653_v63 = vadd.f32 %v1652_v58, %v1526_v3  ;;  %v1390_v45 = vadd.f32 %v1389_v1, %v1256_v28  ;;  %v1263_v23 = vmax.f32 %v987_v43, 0.0  ;;  %v998_v1 = vadd.f32 %v2520_v7, %v2355_v44 }
 0x1b0   :  { %v1533_v58 = vmul.f32 %v1262_v51, %v1262_v51  ;;  %v1265_v4 = vmax.f32 %v995_v2, 0.0  ;;  %v1011_v44 = vadd.f32 %v2520_v7, %v2361_v5  ;;  %v1019_v43 = vadd.f32 %v2520_v7, %v2358_v60 }
 0x1b1   :  { %v1391_v9 = vadd.f32 %v1390_v45, %v1257_v27  ;;  %v1654_v61 = vadd.f32 %v1653_v63, %v1527_v37  ;;  %v1534_v37 = vmul.f32 %v1263_v23, %v1263_v23  ;;  %v1003_v63 = vadd.f32 %v2520_v7, %v2346_v22 }
 0x1b2   :  { %v1535_v45 = vmul.f32 %v1264_v52, %v1264_v52  ;;  %v1022_v5 = vadd.f32 %v2520_v7, %v2364_v12 }
 0x1b3   :  { %v1655_v13 = vadd.f32 %v1654_v61, %v1528_v24  ;;  %v1392_v20 = vadd.f32 %v1391_v9, %v1258_v49  ;;  %v1266_v24 = vmax.f32 %v998_v1, 0.0  ;;  %v1536_v9 = vmul.f32 %v1265_v4, %v1265_v4 }
 0x1b4   :  { %v1267_v61 = vmax.f32 %v1003_v63, 0.0 }
 0x1b5   :  { %v1393_v31 = vadd.f32 %v1392_v20, %v1259_v33  ;;  %v1656_v16 = vadd.f32 %v1655_v13, %v1529_v32  ;;  %v1268_v13 = vmax.f32 %v1006_v30, 0.0  ;;  %v1014_v20 = vadd.f32 %v2520_v7, %v2367_v17 }
 0x1b6   :  { %v1027_v17 = vadd.f32 %v2520_v7, %v2373_v48  ;;  %v1038_v48 = vadd.f32 %v2520_v7, %v2376_v53 }
 0x1b7   :  { %v1657_v28 = vadd.f32 %v1656_v16, %v1530_v54  ;;  %v1394_v55 = vadd.f32 %v1393_v31, %v1260_v11  ;;  %v1269_v54 = vmax.f32 %v1011_v44, 0.0  ;;  %v1538_v31 = vmul.f32 %v1267_v61, %v1267_v61 }
 0x1b8   :  { %v1270_v59 = vmax.f32 %v1014_v20, 0.0  ;;  %v1051_v20 = vadd.f32 %v2520_v7, %v2382_v19 }
 0x1b9   :  { %v1395_v27 = vadd.f32 %v1394_v55, %v1261_v6  ;;  %v1658_v3 = vadd.f32 %v1657_v28, %v1531_v21  ;;  %v1537_v6 = vmul.f32 %v1266_v24, %v1266_v24  ;;  %v1539_v21 = vmul.f32 %v1268_v13, %v1268_v13 }
 0x1ba   :  { %v1540_v55 = vmul.f32 %v1269_v54, %v1269_v54  ;;  %v1541_v1 = vmul.f32 %v1270_v59, %v1270_v59 }
 0x1bb   :  { %v1659_v8 = vadd.f32 %v1658_v3, %v1532_v56  ;;  %v1396_v0 = vadd.f32 %v1395_v27, %v1262_v51  ;;  %v1271_v56 = vmax.f32 %v1019_v43, 0.0  ;;  %v1272_v27 = vmax.f32 %v1022_v5, 0.0 }
 0x1bc   :  { %v1030_v3 = vadd.f32 %v2520_v7, %v2379_v62  ;;  %v1043_v62 = vadd.f32 %v2520_v7, %v2385_v29  ;;  %v1054_v29 = vadd.f32 %v2520_v7, %v2388_v39  ;;  %v1062_v5 = vadd.f32 %v2520_v7, %v2403_v41 }
 0x1bd   :  { %v1397_v26 = vadd.f32 %v1396_v0, %v1263_v23  ;;  %v1660_v49 = vadd.f32 %v1659_v8, %v1533_v58  ;;  %v1273_v8 = vmax.f32 %v1027_v17, 0.0  ;;  %v1542_v0 = vmul.f32 %v1271_v56, %v1271_v56 }
 0x1be   :  { %v1075_v41 = vadd.f32 %v2520_v7, %v2409_v15 }
 0x1bf   :  { %v1661_v38 = vadd.f32 %v1660_v49, %v1534_v37  ;;  %v1398_v33 = vadd.f32 %v1397_v26, %v1264_v52  ;;  %v1543_v37 = vmul.f32 %v1272_v27, %v1272_v27  ;;  %v1274_v26 = vmax.f32 %v1030_v3, 0.0 }
 0x1c1   :  { %v1399_v11 = vadd.f32 %v1398_v33, %v1265_v4  ;;  %v1662_v50 = vadd.f32 %v1661_v38, %v1535_v45  ;;  %v1035_v4 = vadd.f32 %v2520_v7, %v2370_v40  ;;  %v1544_v45 = vmul.f32 %v1273_v8, %v1273_v8 }
 0x1c2   :  { %v1276_v33 = vmax.f32 %v1038_v48, 0.0  ;;  %v1285_v48 = vmax.f32 %v1075_v41, 0.0 }
 0x1c3   :  { %v1663_v32 = vadd.f32 %v1662_v50, %v1536_v9  ;;  %v1400_v22 = vadd.f32 %v1399_v11, %v1266_v24  ;;  %v1275_v30 = vmax.f32 %v1035_v4, 0.0  ;;  %v1046_v9 = vadd.f32 %v2520_v7, %v2391_v47 }
 0x1c4   :  { %v1277_v11 = vmax.f32 %v1043_v62, 0.0  ;;  %v1059_v47 = vadd.f32 %v2520_v7, %v2397_v18  ;;  %v1070_v18 = vadd.f32 %v2520_v7, %v2400_v25 }
 0x1c5   :  { %v1401_v36 = vadd.f32 %v1400_v22, %v1267_v61  ;;  %v1664_v16 = vadd.f32 %v1663_v32, %v1537_v6  ;;  %v1545_v61 = vmul.f32 %v1274_v26, %v1274_v26  ;;  %v1546_v50 = vmul.f32 %v1275_v30, %v1275_v30 }
 0x1c6   :  { %v1547_v32 = vmul.f32 %v1276_v33, %v1276_v33  ;;  %v1278_v22 = vmax.f32 %v1046_v9, 0.0  ;;  %v1556_v9 = vmul.f32 %v1285_v48, %v1285_v48 }
 0x1c7   :  { %v1665_v51 = vadd.f32 %v1664_v16, %v1538_v31  ;;  %v1402_v28 = vadd.f32 %v1401_v36, %v1268_v13  ;;  %v1548_v31 = vmul.f32 %v1277_v11, %v1277_v11  ;;  %v1279_v36 = vmax.f32 %v1051_v20, 0.0 }
 0x1c9   :  { %v1403_v2 = vadd.f32 %v1402_v28, %v1269_v54  ;;  %v1666_v23 = vadd.f32 %v1665_v51, %v1539_v21  ;;  %v1280_v21 = vmax.f32 %v1054_v29, 0.0  ;;  %v1549_v51 = vmul.f32 %v1278_v22, %v1278_v22 }
 0x1ca   :  { %v1281_v28 = vmax.f32 %v1059_v47, 0.0 }
 0x1cb   :  { %v1667_v52 = vadd.f32 %v1666_v23, %v1540_v55  ;;  %v1404_v60 = vadd.f32 %v1403_v2, %v1270_v59  ;;  %v1550_v55 = vmul.f32 %v1279_v36, %v1279_v36  ;;  %v1551_v2 = vmul.f32 %v1280_v21, %v1280_v21 }
 0x1cc   :  { %v1282_v23 = vmax.f32 %v1062_v5, 0.0 }
 0x1cd   :  { %v1405_v12 = vadd.f32 %v1404_v60, %v1271_v56  ;;  %v1668_v58 = vadd.f32 %v1667_v52, %v1541_v1  ;;  %v1067_v56 = vadd.f32 %v2520_v7, %v2394_v10  ;;  %v1552_v52 = vmul.f32 %v1281_v28, %v1281_v28 }
 0x1cf   :  { %v1669_v49 = vadd.f32 %v1668_v58, %v1542_v0  ;;  %v1406_v63 = vadd.f32 %v1405_v12, %v1272_v27  ;;  %v1283_v60 = vmax.f32 %v1067_v56, 0.0  ;;  %v1284_v0 = vmax.f32 %v1070_v18, 0.0  ;;  %v2676_v12 = vld [vmem:[#allocation16_spill] sm:$0xff] }
 0x1d0   :  { %v1078_v58 = vadd.f32 %v2520_v7, %v2676_v12  ;;  %v2685_v12 = vld [vmem:[#allocation21_spill] sm:$0xff] }
 0x1d1   :  { %v1407_v24 = vadd.f32 %v1406_v63, %v1273_v8  ;;  %v1670_v38 = vadd.f32 %v1669_v49, %v1543_v37  ;;  %v1553_v37 = vmul.f32 %v1282_v23, %v1282_v23  ;;  %v2677_v63 = vld [vmem:[#allocation14_spill] sm:$0xff]  ;;  %v1555_v62 = vmul.f32 %v1284_v0, %v1284_v0 }
 0x1d3   :  { %v1671_v44 = vadd.f32 %v1670_v38, %v1544_v45  ;;  %v1408_v40 = vadd.f32 %v1407_v24, %v1274_v26  ;;  %v1554_v26 = vmul.f32 %v1283_v60, %v1283_v60  ;;  %v1083_v45 = vadd.f32 %v2520_v7, %v2677_v63  ;;  %v2687_v63 = vld [vmem:[#allocation26_spill] sm:$0xff] }
 0x1d4   :  { %v1286_v24 = vmax.f32 %v1078_v58, 0.0  ;;  %v1115_v58 = vadd.f32 %v2520_v7, %v2685_v12 }
 0x1d5   :  { %v1409_v53 = vadd.f32 %v1408_v40, %v1275_v30  ;;  %v1672_v13 = vadd.f32 %v1671_v44, %v1545_v61  ;;  %v2678_v30 = vld [vmem:[#allocation15_spill] sm:$0xff]  ;;  %v2679_v44 = vld [vmem:[#allocation18_spill] sm:$0xff]  ;;  %v1287_v61 = vmax.f32 %v1083_v45, 0.0  ;;  %v1123_v45 = vadd.f32 %v2520_v7, %v2687_v63 }
 0x1d6   :  { %v1086_v15 = vadd.f32 %v2520_v7, %v2678_v30  ;;  %v1091_v40 = vadd.f32 %v2520_v7, %v2679_v44 }
 0x1d7   :  { %v1673_v6 = vadd.f32 %v1672_v13, %v1546_v50  ;;  %v1410_v54 = vadd.f32 %v1409_v53, %v1276_v33  ;;  %v2680_v13 = vld [vmem:[#allocation20_spill] sm:$0xff] }
 0x1d8   :  { %v1288_v53 = vmax.f32 %v1086_v15, 0.0  ;;  %v1094_v20 = vadd.f32 %v2520_v7, %v2680_v13  ;;  %v2689_v13 = vld [vmem:[#allocation25_spill] sm:$0xff] }
 0x1d9   :  { %v1411_v16 = vadd.f32 %v1410_v54, %v1277_v11  ;;  %v1674_v43 = vadd.f32 %v1673_v6, %v1547_v32  ;;  %v1289_v6 = vmax.f32 %v1091_v40, 0.0  ;;  %v1558_v54 = vmul.f32 %v1287_v61, %v1287_v61 }
 0x1db   :  { %v1675_v59 = vadd.f32 %v1674_v43, %v1548_v31  ;;  %v1412_v19 = vadd.f32 %v1411_v16, %v1278_v22  ;;  %v1557_v22 = vmul.f32 %v1286_v24, %v1286_v24  ;;  %v1559_v43 = vmul.f32 %v1288_v53, %v1288_v53 }
 0x1dd   :  { %v1413_v39 = vadd.f32 %v1412_v19, %v1279_v36  ;;  %v1676_v17 = vadd.f32 %v1675_v59, %v1549_v51  ;;  %v2681_v36 = vld [vmem:[#allocation17_spill] sm:$0xff]  ;;  %v1290_v59 = vmax.f32 %v1094_v20, 0.0  ;;  %v1131_v20 = vadd.f32 %v2520_v7, %v2689_v13 }
 0x1de   :  { %v1099_v16 = vadd.f32 %v2520_v7, %v2681_v36  ;;  %v2691_v36 = vld [vmem:[#allocation30_spill] sm:$0xff] }
 0x1df   :  { %v1677_v27 = vadd.f32 %v1676_v17, %v1550_v55  ;;  %v1414_v3 = vadd.f32 %v1413_v39, %v1280_v21  ;;  %v2682_v21 = vld [vmem:[#allocation19_spill] sm:$0xff]  ;;  %v2683_v55 = vld [vmem:[#allocation22_spill] sm:$0xff]  ;;  %v1561_v41 = vmul.f32 %v1290_v59, %v1290_v59 }
 0x1e0   :  { %v1102_v5 = vadd.f32 %v2520_v7, %v2682_v21  ;;  %v1107_v39 = vadd.f32 %v2520_v7, %v2683_v55  ;;  %v1291_v17 = vmax.f32 %v1099_v16, 0.0  ;;  %v1139_v16 = vadd.f32 %v2520_v7, %v2691_v36 }
 0x1e1   :  { %v1415_v1 = vadd.f32 %v1414_v3, %v1281_v28  ;;  %v1678_v8 = vadd.f32 %v1677_v27, %v1551_v2  ;;  %v1560_v28 = vmul.f32 %v1289_v6, %v1289_v6  ;;  %v1179_v36 = vadd.f32 %v2520_v7, %v2481_v57 }
 0x1e2   :  { %v1292_v18 = vmax.f32 %v1102_v5, 0.0 }
 0x1e3   :  { %v1679_v4 = vadd.f32 %v1678_v8, %v1552_v52  ;;  %v1416_v10 = vadd.f32 %v1415_v1, %v1282_v23  ;;  %v2684_v23 = vld [vmem:[#allocation24_spill] sm:$0xff]  ;;  %v1562_v1 = vmul.f32 %v1291_v17, %v1291_v17 }
 0x1e4   :  { %v1110_v27 = vadd.f32 %v2520_v7, %v2684_v23 }
 0x1e5   :  { %v1417_v25 = vadd.f32 %v1416_v10, %v1283_v60  ;;  %v1680_v49 = vadd.f32 %v1679_v4, %v1553_v37  ;;  %v1293_v60 = vmax.f32 %v1107_v39, 0.0  ;;  %v1563_v4 = vmul.f32 %v1292_v18, %v1292_v18  ;;  %v2686_v10 = vld [vmem:[#allocation23_spill] sm:$0xff] }
 0x1e6   :  { %v1118_v37 = vadd.f32 %v2520_v7, %v2686_v10  ;;  %v1301_v39 = vmax.f32 %v1139_v16, 0.0 }
 0x1e7   :  { %v1681_v38 = vadd.f32 %v1680_v49, %v1554_v26  ;;  %v1418_v33 = vadd.f32 %v1417_v25, %v1284_v0  ;;  %v1564_v49 = vmul.f32 %v1293_v60, %v1293_v60 }
 0x1e9   :  { %v1419_v11 = vadd.f32 %v1418_v33, %v1285_v48  ;;  %v1682_v50 = vadd.f32 %v1681_v38, %v1555_v62  ;;  %v1294_v48 = vmax.f32 %v1110_v27, 0.0  ;;  %v1295_v62 = vmax.f32 %v1115_v58, 0.0  ;;  %v2688_v38 = vld [vmem:[#allocation28_spill] sm:$0xff] }
 0x1ea   :  { %v1126_v33 = vadd.f32 %v2520_v7, %v2688_v38  ;;  %v2696_v38 = vld [vmem:[#allocation34_spill] sm:$0xff] }
 0x1eb   :  { %v1683_v32 = vadd.f32 %v1682_v50, %v1556_v9  ;;  %v1420_v29 = vadd.f32 %v1419_v11, %v1286_v24  ;;  %v1296_v24 = vmax.f32 %v1118_v37, 0.0  ;;  %v1565_v40 = vmul.f32 %v1294_v48, %v1294_v48 }
 0x1ec   :  { %v1566_v11 = vmul.f32 %v1295_v62, %v1295_v62  ;;  %v1158_v37 = vadd.f32 %v2520_v7, %v2477_v34  ;;  %v1171_v34 = vadd.f32 %v2520_v7, %v2485_v14  ;;  %v1182_v14 = vadd.f32 %v2520_v7, %v2489_v42 }
 0x1ed   :  { %v1421_v31 = vadd.f32 %v1420_v29, %v1287_v61  ;;  %v1684_v47 = vadd.f32 %v1683_v32, %v1557_v22  ;;  %v1297_v61 = vmax.f32 %v1123_v45, 0.0  ;;  %v1567_v32 = vmul.f32 %v1296_v24, %v1296_v24  ;;  %v2690_v29 = vld [vmem:[#allocation27_spill] sm:$0xff] }
 0x1ee   :  { %v1134_v22 = vadd.f32 %v2520_v7, %v2690_v29 }
 0x1ef   :  { %v1685_v19 = vadd.f32 %v1684_v47, %v1558_v54  ;;  %v1422_v51 = vadd.f32 %v1421_v31, %v1288_v53  ;;  %v1568_v47 = vmul.f32 %v1297_v61, %v1297_v61 }
 0x1f1   :  { %v1423_v56 = vadd.f32 %v1422_v51, %v1289_v6  ;;  %v1686_v2 = vadd.f32 %v1685_v19, %v1559_v43  ;;  %v1298_v6 = vmax.f32 %v1126_v33, 0.0  ;;  %v1299_v43 = vmax.f32 %v1131_v20, 0.0 }
 0x1f2   :  { %v1142_v19 = vadd.f32 %v2520_v7, %v2463_v35  ;;  %v1166_v33 = vadd.f32 %v2520_v7, %v2696_v38 }
 0x1f3   :  { %v1687_v3 = vadd.f32 %v1686_v2, %v1560_v28  ;;  %v1424_v52 = vadd.f32 %v1423_v56, %v1290_v59  ;;  %v1300_v59 = vmax.f32 %v1134_v22, 0.0  ;;  %v1569_v55 = vmul.f32 %v1298_v6, %v1298_v6 }
 0x1f4   :  { %v1308_v13 = vmax.f32 %v1166_v33, 0.0  ;;  %v1309_v22 = vmax.f32 %v1171_v34, 0.0 }
 0x1f5   :  { %v1425_v8 = vadd.f32 %v1424_v52, %v1291_v17  ;;  %v1688_v0 = vadd.f32 %v1687_v3, %v1561_v41  ;;  %v1570_v17 = vmul.f32 %v1299_v43, %v1299_v43  ;;  %v1571_v27 = vmul.f32 %v1300_v59, %v1300_v59  ;;  %v2693_v3 = vld [vmem:[#allocation31_spill] sm:$0xff] }
 0x1f6   :  { %v1150_v52 = vadd.f32 %v2520_v7, %v2693_v3  ;;  %v1302_v41 = vmax.f32 %v1142_v19, 0.0  ;;  %v1579_v16 = vmul.f32 %v1308_v13, %v1308_v13  ;;  %v1311_v19 = vmax.f32 %v1179_v36, 0.0 }
 0x1f7   :  { %v1689_v26 = vadd.f32 %v1688_v0, %v1562_v1  ;;  %v1426_v25 = vadd.f32 %v1425_v8, %v1292_v18  ;;  %v2692_v18 = vld [vmem:[#allocation29_spill] sm:$0xff]  ;;  %v1572_v8 = vmul.f32 %v1301_v39, %v1301_v39 }
 0x1f8   :  { %v1147_v23 = vadd.f32 %v2520_v7, %v2692_v18  ;;  %v2694_v0 = vld [vmem:[#allocation33_spill] sm:$0xff]  ;;  %v1304_v10 = vmax.f32 %v1150_v52, 0.0 }
 0x1f9   :  { %v1427_v30 = vadd.f32 %v1426_v25, %v1293_v60  ;;  %v1690_v15 = vadd.f32 %v1689_v26, %v1563_v4  ;;  %v1155_v35 = vadd.f32 %v2520_v7, %v2694_v0  ;;  %v1573_v25 = vmul.f32 %v1302_v41, %v1302_v41 }
 0x1fa   :  { %v1303_v12 = vmax.f32 %v1147_v23, 0.0 }
 0x1fb   :  { %v1691_v9 = vadd.f32 %v1690_v15, %v1564_v49  ;;  %v1428_v44 = vadd.f32 %v1427_v30, %v1294_v48  ;;  %v1305_v49 = vmax.f32 %v1155_v35, 0.0  ;;  %v2695_v30 = vld [vmem:[#allocation32_spill] sm:$0xff] }
 0x1fc   :  { %v1574_v63 = vmul.f32 %v1303_v12, %v1303_v12  ;;  %v1163_v15 = vadd.f32 %v2520_v7, %v2695_v30 }
 0x1fd   :  { %v1429_v50 = vadd.f32 %v1428_v44, %v1295_v62  ;;  %v1692_v53 = vadd.f32 %v1691_v9, %v1565_v40  ;;  %v1306_v9 = vmax.f32 %v1158_v37, 0.0 }
 0x1ff   :  { %v1693_v54 = vadd.f32 %v1692_v53, %v1566_v11  ;;  %v1430_v31 = vadd.f32 %v1429_v50, %v1296_v24  ;;  %v1575_v24 = vmul.f32 %v1304_v10, %v1304_v10  ;;  %v1307_v11 = vmax.f32 %v1163_v15, 0.0 }
 0x200   :  { %v1577_v20 = vmul.f32 %v1306_v9, %v1306_v9 }
 0x201   :  { %v1431_v21 = vadd.f32 %v1430_v31, %v1297_v61  ;;  %v1694_v5 = vadd.f32 %v1693_v54, %v1567_v32  ;;  %v1576_v61 = vmul.f32 %v1305_v49, %v1305_v49  ;;  %v1578_v54 = vmul.f32 %v1307_v11, %v1307_v11 }
 0x203   :  { %v1695_v51 = vadd.f32 %v1694_v5, %v1568_v47  ;;  %v1432_v28 = vadd.f32 %v1431_v21, %v1298_v6  ;;  %v1174_v6 = vadd.f32 %v2520_v7, %v2493_v46  ;;  %v1580_v5 = vmul.f32 %v1309_v22, %v1309_v22 }
 0x205   :  { %v1433_v56 = vadd.f32 %v1432_v28, %v1299_v43  ;;  %v1696_v2 = vadd.f32 %v1695_v51, %v1569_v55 }
 0x207   :  { %v1697_v60 = vadd.f32 %v1696_v2, %v1570_v17  ;;  %v1434_v1 = vadd.f32 %v1433_v56, %v1300_v59  ;;  %v1310_v59 = vmax.f32 %v1174_v6, 0.0  ;;  %v1582_v56 = vmul.f32 %v1311_v19, %v1311_v19 }
 0x209   :  { %v1435_v58 = vadd.f32 %v1434_v1, %v1301_v39  ;;  %v1698_v4 = vadd.f32 %v1697_v60, %v1571_v27  ;;  %v1312_v39 = vmax.f32 %v1182_v14, 0.0  ;;  %v1581_v17 = vmul.f32 %v1310_v59, %v1310_v59 }
 0x20b   :  { %v1699_v48 = vadd.f32 %v1698_v4, %v1572_v8  ;;  %v1436_v26 = vadd.f32 %v1435_v58, %v1302_v41  ;;  %v1583_v23 = vmul.f32 %v1312_v39, %v1312_v39 }
 0x20d   :  { %v1437_v45 = vadd.f32 %v1436_v26, %v1303_v12  ;;  %v1700_v62 = vadd.f32 %v1699_v48, %v1573_v25  ;;  %v1319_v12 = vld [vmem:[#allocation7] sm:$0x1] }
 0x20f   :  { %v1701_v44 = vadd.f32 %v1700_v62, %v1574_v63  ;;  %v1438_v40 = vadd.f32 %v1437_v45, %v1304_v10  ;;  %v1455_v10 = vld [vmem:[#allocation8] sm:$0x1] }
 0x211   :  { %v1439_v50 = vadd.f32 %v1438_v40, %v1305_v49  ;;  %v1702_v53 = vadd.f32 %v1701_v44, %v1575_v24 }
 0x213   :  { %v1703_v32 = vadd.f32 %v1702_v53, %v1576_v61  ;;  %v1440_v29 = vadd.f32 %v1439_v50, %v1306_v9 }
 0x215   :  { %v1441_v31 = vadd.f32 %v1440_v29, %v1307_v11  ;;  %v1704_v47 = vadd.f32 %v1703_v32, %v1577_v20 }
 0x217   :  { %v1705_v43 = vadd.f32 %v1704_v47, %v1578_v54  ;;  %v1442_v21 = vadd.f32 %v1441_v31, %v1308_v13 }
 0x219   :  { %v1443_v51 = vadd.f32 %v1442_v21, %v1309_v22  ;;  %v1706_v28 = vadd.f32 %v1705_v43, %v1579_v16 }
 0x21b   :  { %v1707_v55 = vadd.f32 %v1706_v28, %v1580_v5  ;;  %v1444_v46 = vadd.f32 %v1443_v51, %v1310_v59 }
 0x21d   :  { %v1445_v2 = vadd.f32 %v1444_v46, %v1311_v19  ;;  %v1708_v18 = vadd.f32 %v1707_v55, %v1581_v17 }
 0x21f   :  { %v1446_v57 = vadd.f32 %v1445_v2, %v1312_v39  ;;  %v1709_v27 = vadd.f32 %v1708_v18, %v1582_v56 }
 0x221   :  { %v1447_v3 = vrot.slane %v1446_v57, 4  ;;  %v1710_v52 = vadd.f32 %v1709_v27, %v1583_v23 }
 0x223   :  { %v1448_v42 = vadd.f32 %v1447_v3, %v1446_v57  ;;  %v1711_v7 = vrot.slane %v1710_v52, 4 }
 0x225   :  { %v1449_v41 = vrot.slane %v1448_v42, 2  ;;  %v1712_v60 = vadd.f32 %v1711_v7, %v1710_v52 }
 0x227   :  { %v1450_v1 = vadd.f32 %v1449_v41, %v1448_v42  ;;  %v1713_v8 = vrot.slane %v1712_v60, 2 }
 0x229   :  { %v1451_v0 = vrot.slane %v1450_v1, 1  ;;  %v1714_v35 = vadd.f32 %v1713_v8, %v1712_v60 }
 0x22b   :  { %v1452_v58 = vadd.f32 %v1451_v0, %v1450_v1  ;;  %v1715_v4 = vrot.slane %v1714_v35, 1 }
 0x22d   :  { %v1453_v37 = vadd.f32 %v1452_v58, %v1319_v12  ;;  %v1716_v48 = vadd.f32 %v1715_v4, %v1714_v35 }
 0x22f   :  { %1454 = vst [vmem:[#allocation7] sm:$0x1] %v1453_v37  ;;  %v1717_v26 = vadd.f32 %v1716_v48, %v1455_v10 }
 0x230   :  { %2191 = shalt.err (!%p2188_p6)
}
 0x231   :  { %s2192_s24 = scalar_lea.hbm %s2653_s3, 16 }
 0x232   :  { %p2193_p7 = scmp.ne.s32.totalorder %s2653_s3, %s2192_s24  ;;  %p2196_p8 = scmp.lt.u32.totalorder %s2192_s24, %s2653_s3 }
 0x234   :  { %p2198_p9 = pnand %p2196_p8, %p2193_p7 }
 0x236   :  { %2201 = shalt.err (!%p2198_p9)
}
 0x237   :  { %1728 = dma.vmem_to_hbm [thread:$0]  %s1726_s17, 16, %s2653_s3, [#allocation4]   ;;  %1718 = vst [vmem:[#allocation8] sm:$0x1] %v1717_v26 }
 0x238   :  { %s2202_s5 = scalar_lea.vmem %s2618_s19, 16  ;;  %s2206_s6 = scalar_lea.vmem %s2618_s19, 32 }
 0x239   :  { %p2203_p10 = scmp.ne.s32.totalorder %s2618_s19, %s2202_s5  ;;  %p2207_p11 = scmp.lt.s32.totalorder %s2618_s19, %s2618_s19 }
 0x23a   :  { %p2208_p12 = scmp.lt.s32.totalorder %s2206_s6, %s2202_s5 }
 0x23c   :  { %p2209_p13 = por %p2208_p12, %p2207_p11 }
 0x23e   :  { %p2210_p0 = pnand %p2209_p13, %p2203_p10 }
 0x240   :  { %2213 = shalt.err (!%p2210_p0)
}
 0x241   :  { %s2214_s9 = scalar_lea.hbm %s2654_s4, 16 }
 0x242   :  { %p2215_p1 = scmp.ne.s32.totalorder %s2654_s4, %s2214_s9  ;;  %p2218_p2 = scmp.lt.u32.totalorder %s2214_s9, %s2654_s4 }
 0x244   :  { %p2220_p3 = pnand %p2218_p2, %p2215_p1 }
 0x246   :  { %2223 = shalt.err (!%p2220_p3)
}
 0x247   :  { %1738 = dma.vmem_to_hbm [thread:$0]  %s2618_s19, 16, %s2654_s4, [#allocation9]  }
 0x248   :  { %2228 = dma.done.wait [#allocation4], 16  }
 0x249   :  { %2229 = vsyncadd [#allocation4], 4294967280 }
 0x24a   :  { %2230 = dma.done.wait [#allocation9], 16  }
 0x24b   :  { %2231 = vsyncadd [#allocation9], 4294967280 }
 0x24c   :  { %1745 = vsyncpa [#allocation3], 1 }
 0x24d   :  { %1746 = vsyncpa [#allocation6], 1 }
 0x24e   :  { %1747 = vsyncpa [#allocation4], 1 }
 0x24f   :  { %1748 = vsyncpa [#allocation9], 1 }

</bundles_post_ra>
